<compile_context>
chip_gen: v6e
topology: v6e:2x2x1
jax: 0.10.0
libtpu: 0.0.40
codegen_flags: <defaults>
</compile_context>

<pallas_src>
import functools

import jax
import jax.numpy as jnp
from jax.experimental import pallas as pl
from jax.experimental.pallas import tpu as pltpu


def _round_up(x, m):
    return (x + m - 1) // m * m


# ----------------------------------------------------------------------------
# Pallas kernel: full forward pass for one graph-block.
# ----------------------------------------------------------------------------
def gnn_forward_kernel(
    src_ref,    # [E, 1]   int32  edge sources (pad = -1)
    dst_ref,    # [1, E]   int32  edge targets (pad = -1)
    bat_ref,    # [1, N]   int32  local graph id per node (pad = -1)
    x_ref,      # [N, F]   bf16   node features
    we_ref,     # [F, HP]  bf16   encoder Linear weight
    wc1_ref,    # [HP, HP] bf16   GCNConv 1 weight
    wc2_ref,    # [HP, HP] bf16   GCNConv 2 weight
    w1_ref,     # [HP, HP] bf16   head W1
    rows_ref,   # [8, HP]  f32    packed rows: be, ln_g, ln_b, bc1, bc2, b1, w2, b2
    out_ref,    # [1, G]   f32    lane-dense per-graph outputs
    *,
    hidden_dim,  # logical (unpadded) hidden width (LayerNorm statistics)
):
    f32, bf16 = jnp.float32, jnp.bfloat16
    n = x_ref.shape[0]
    e = src_ref.shape[0]
    g = out_ref.shape[1]
    hp = we_ref.shape[1]

    # ---- packed row parameters (one DMA, static slices) ----------------------
    be = rows_ref[0:1, :]
    ln_g = rows_ref[1:2, :]
    ln_b = rows_ref[2:3, :]
    bc1 = rows_ref[3:4, :]
    bc2 = rows_ref[4:5, :]
    b1 = rows_ref[5:6, :]
    w2 = rows_ref[6:7, :]
    b2 = rows_ref[7:8, :][:, 0:1]          # scalar held as [1, 1]

    # ---- adjacency (A + I) built in VMEM from the edge list ------------------
    # one_hot(dst)^T [N,E] @ one_hot(src) [E,N] counts edges j -> i (GCNConv
    # aggregation; parallel edges sum).  Pad edges use id -1 -> no match.
    node_ids_ne = jax.lax.broadcasted_iota(jnp.int32, (n, e), 0)
    node_ids_en = jax.lax.broadcasted_iota(jnp.int32, (e, n), 1)
    oh_dst_t = jnp.where(node_ids_ne == dst_ref[...], 1.0, 0.0).astype(bf16)   # [N,E]
    oh_src = jnp.where(node_ids_en == src_ref[...], 1.0, 0.0).astype(bf16)     # [E,N]
    adj = jnp.dot(oh_dst_t, oh_src, preferred_element_type=f32)                # [N,N]
    row_ids = jax.lax.broadcasted_iota(jnp.int32, (n, n), 0)
    col_ids = jax.lax.broadcasted_iota(jnp.int32, (n, n), 1)
    adj = adj + jnp.where(row_ids == col_ids, 1.0, 0.0)                        # + I
    adj_bf = adj.astype(bf16)              # small integer counts -> exact in bf16

    deg = jnp.sum(adj, axis=1, keepdims=True)                                  # [N,1]
    d_inv_sqrt = jax.lax.rsqrt(deg)        # self loop -> deg >= 1

    # ---- mean-pool membership mask built from `batch` -------------------------
    graph_ids = jax.lax.broadcasted_iota(jnp.int32, (g, n), 0)                 # [G,N]
    member = jnp.where(graph_ids == bat_ref[...], 1.0, 0.0)                    # f32 0/1
    counts = jnp.maximum(jnp.sum(member, axis=1, keepdims=True), 1.0)          # [G,1]
    inv_counts = pl.reciprocal(counts, approx=True)

    # ---- node_encoder: Linear -> ReLU -> LayerNorm (f32, two-pass variance) ---
    h = jnp.dot(x_ref[...], we_ref[...], preferred_element_type=f32) + be
    h = jnp.maximum(h, 0.0)
    inv_h = 1.0 / float(hidden_dim)
    lane_mask = (jax.lax.broadcasted_iota(jnp.int32, (1, hp), 1)
                 < hidden_dim).astype(f32)
    mean = jnp.sum(h, axis=-1, keepdims=True) * inv_h      # padded lanes are zero
    centered = (h - mean) * lane_mask                       # zero on padded lanes
    var = jnp.sum(centered * centered, axis=-1, keepdims=True) * inv_h
    h = centered * jax.lax.rsqrt(var + 1e-5) * ln_g + ln_b  # pad lanes stay zero

    # ---- 2x GCNConv:  h = ReLU( D^-1/2 (A+I) D^-1/2 (h W) + b ) ---------------
    for wc_ref, bc in ((wc1_ref, bc1), (wc2_ref, bc2)):
        hw = jnp.dot(h.astype(bf16), wc_ref[...], preferred_element_type=f32)
        msg = jnp.dot(adj_bf, (d_inv_sqrt * hw).astype(bf16),
                      preferred_element_type=f32)
        h = jnp.maximum(d_inv_sqrt * msg + bc, 0.0)
        # Dropout(p=0.35) is identity at inference time (eval mode).

    # ---- global_mean_pool: 0/1 membership matmul (sum) then f32 scale ---------
    pooled = jnp.dot(member.astype(bf16), h.astype(bf16),
                     preferred_element_type=f32) * inv_counts                  # [G,HP]

    # ---- regression head (lane-dense output: graphs on the lane axis) ---------
    z = jnp.maximum(
        jnp.dot(pooled.astype(bf16), w1_ref[...], preferred_element_type=f32) + b1,
        0.0,
    )                                                                           # [G,HP]
    out_ref[...] = (
        jnp.dot(w2.astype(bf16), z.astype(bf16).T, preferred_element_type=f32) + b2
    )                                                                           # [1,G]


# ----------------------------------------------------------------------------
# Wrapper: pack graph blocks, pad, build packed param rows, pallas_call.
# ----------------------------------------------------------------------------
def gnn_forward(blocks, params):
    """blocks: list of dicts with keys
         x          [n_i, F]  float node features
         edge_index [2, e_i]  int   (src, dst) directed edges
         batch      [n_i]     int   LOCAL graph id per node (0..num_graphs-1)
         num_graphs int
       Returns [sum_i num_graphs_i, 1] float32."""
    f_in = blocks[0]["x"].shape[1]
    h_dim = params["We"].shape[1]
    assert params["W2"].shape[1] == 1, "head assumes output_dim == 1 (as in the spec)"

    hp = _round_up(h_dim, 128)                                    # lane-dense hidden
    n_pad = _round_up(max(b["x"].shape[0] for b in blocks), 8)
    e_pad = _round_up(max(max(b["edge_index"].shape[1], 1) for b in blocks), 8)
    g_pad = _round_up(max(b["num_graphs"] for b in blocks), 128)  # lane-dense output
    nb = len(blocks)

    bf16, f32 = jnp.bfloat16, jnp.float32

    def pad2(a, rows, cols, dtype):
        a = jnp.asarray(a, f32)
        return jnp.pad(a, ((0, rows - a.shape[0]), (0, cols - a.shape[1]))).astype(dtype)

    xs, srcs, dsts, bats = [], [], [], []
    for b in blocks:
        n_i = b["x"].shape[0]
        e_i = b["edge_index"].shape[1]
        xs.append(pad2(b["x"], n_pad, f_in, bf16))
        srcs.append(jnp.full((e_pad, 1), -1, jnp.int32)
                    .at[:e_i, 0].set(jnp.asarray(b["edge_index"][0], jnp.int32)))
        dsts.append(jnp.full((1, e_pad), -1, jnp.int32)
                    .at[0, :e_i].set(jnp.asarray(b["edge_index"][1], jnp.int32)))
        bats.append(jnp.full((1, n_pad), -1, jnp.int32)
                    .at[0, :n_i].set(jnp.asarray(b["batch"], jnp.int32)))
    x_b = jnp.stack(xs)            # [B, N, F]   bf16
    src_b = jnp.stack(srcs)        # [B, E, 1]   int32
    dst_b = jnp.stack(dsts)        # [B, 1, E]   int32
    bat_b = jnp.stack(bats)        # [B, 1, N]   int32

    # Packed tiny row parameters -> single [8, HP] f32 operand.
    w2_row = jnp.asarray(params["W2"], f32)[:, 0][None, :]       # [1, h_dim]
    b2_row = jnp.broadcast_to(jnp.asarray(params["b2"], f32).reshape(1, 1), (1, h_dim))
    rows = jnp.concatenate(
        [
            pad2(params["be"], 1, hp, f32),
            pad2(params["ln_g"], 1, hp, f32),
            pad2(params["ln_b"], 1, hp, f32),
            pad2(params["bc1"], 1, hp, f32),
            pad2(params["bc2"], 1, hp, f32),
            pad2(params["b1"], 1, hp, f32),
            pad2(w2_row, 1, hp, f32),
            pad2(b2_row, 1, hp, f32),
        ],
        axis=0,
    )                                                             # [8, HP]

    operands = (
        src_b, dst_b, bat_b, x_b,
        pad2(params["We"], f_in, hp, bf16),
        pad2(params["Wc1"], hp, hp, bf16),
        pad2(params["Wc2"], hp, hp, bf16),
        pad2(params["W1"], hp, hp, bf16),
        rows,
    )

    sq = pl.Squeezed()
    per_block = lambda b: (b, 0, 0)
    const2 = lambda b: (0, 0)                # weights stay VMEM-resident across steps
    in_specs = [
        pl.BlockSpec((sq, e_pad, 1), per_block),
        pl.BlockSpec((sq, 1, e_pad), per_block),
        pl.BlockSpec((sq, 1, n_pad), per_block),
        pl.BlockSpec((sq, n_pad, f_in), per_block),
        pl.BlockSpec((f_in, hp), const2),
        pl.BlockSpec((hp, hp), const2),
        pl.BlockSpec((hp, hp), const2),
        pl.BlockSpec((hp, hp), const2),
        pl.BlockSpec((8, hp), const2),
    ]
    out_spec = pl.BlockSpec((sq, 1, g_pad), per_block)

    kernel = functools.partial(gnn_forward_kernel, hidden_dim=h_dim)

    out = pl.pallas_call(
        kernel,
        out_shape=jax.ShapeDtypeStruct((nb, 1, g_pad), jnp.float32),
        grid=(nb,),
        in_specs=in_specs,
        out_specs=out_spec,
        compiler_params=pltpu.CompilerParams(
            dimension_semantics=("parallel",),      # v7x: shard blocks across 2 TCs
            vmem_limit_bytes=32 * 1024 * 1024,
        ),
    )(*operands)

    # Slice valid graphs from each lane-dense block row -> [total_graphs, 1].
    pieces = [out[i, 0, : blocks[i]["num_graphs"], None] for i in range(nb)]
    return jnp.concatenate(pieces, axis=0)


# ----------------------------------------------------------------------------
# Deterministic parameter construction (shapes from GNNModel.__init__).
# ----------------------------------------------------------------------------
def make_params(key, input_dim, hidden_dim, output_dim):
    ks = jax.random.split(key, 8)
    s_in = 1.0 / jnp.sqrt(jnp.float32(input_dim))
    s_h = 1.0 / jnp.sqrt(jnp.float32(hidden_dim))
    return {
        "We": jax.random.uniform(ks[0], (input_dim, hidden_dim), jnp.float32, -s_in, s_in),
        "be": jax.random.uniform(ks[1], (1, hidden_dim), jnp.float32, -s_in, s_in),
        "ln_g": jnp.ones((1, hidden_dim), jnp.float32),
        "ln_b": jnp.zeros((1, hidden_dim), jnp.float32),
        "Wc1": jax.random.uniform(ks[2], (hidden_dim, hidden_dim), jnp.float32, -s_h, s_h),
        "bc1": jnp.zeros((1, hidden_dim), jnp.float32),
        "Wc2": jax.random.uniform(ks[3], (hidden_dim, hidden_dim), jnp.float32, -s_h, s_h),
        "bc2": jnp.zeros((1, hidden_dim), jnp.float32),
        "W1": jax.random.normal(ks[4], (hidden_dim, hidden_dim), jnp.float32),
        "b1": jax.random.normal(ks[5], (1, hidden_dim), jnp.float32),
        "W2": jax.random.normal(ks[6], (hidden_dim, output_dim), jnp.float32),
        "b2": jax.random.normal(ks[7], (1, output_dim), jnp.float32),
    }


# ----------------------------------------------------------------------------
# Pure-JAX f32 reference (GCNConv with symmetric norm + self loops).
# ----------------------------------------------------------------------------
def reference_forward(x, edge_index, batch, num_graphs, params):
    n = x.shape[0]
    src, dst = edge_index[0], edge_index[1]
    adj = jnp.zeros((n, n), jnp.float32).at[dst, src].add(1.0) + jnp.eye(n)
    dis = 1.0 / jnp.sqrt(adj.sum(axis=1, keepdims=True))
    h = jnp.maximum(x @ params["We"] + params["be"], 0.0)
    mean = h.mean(-1, keepdims=True)
    var = ((h - mean) ** 2).mean(-1, keepdims=True)
    h = (h - mean) / jnp.sqrt(var + 1e-5) * params["ln_g"] + params["ln_b"]
    for wc, bc in (("Wc1", "bc1"), ("Wc2", "bc2")):
        hw = h @ params[wc]
        h = jnp.maximum(dis * (adj @ (dis * hw)) + params[bc], 0.0)
    member = (batch[None, :] == jnp.arange(num_graphs)[:, None]).astype(jnp.float32)
    pooled = member @ h / jnp.maximum(member.sum(1, keepdims=True), 1.0)
    z = jnp.maximum(pooled @ params["W1"] + params["b1"], 0.0)
    return z @ params["W2"] + params["b2"]


if __name__ == "__main__":
    # hidden_dim=48, num_layers=2, output_dim=1 as in the spec; input_dim=8.
    # Batched call: 2 graph-blocks, each packing 8 chain graphs of 16 nodes
    # (128 nodes / 240 directed edges per block).
    F_IN, H, OUT = 8, 48, 1
    NODES_PER_GRAPH, GRAPHS_PER_BLOCK, NUM_BLOCKS = 16, 8, 2

    key = jax.random.PRNGKey(0)
    keys = jax.random.split(key, NUM_BLOCKS + 1)
    params = make_params(keys[0], F_IN, H, OUT)

    def make_block(k):
        n = NODES_PER_GRAPH * GRAPHS_PER_BLOCK
        x = jax.random.normal(k, (n, F_IN), jnp.float32)
        srcs, dsts, batch = [], [], []
        for g in range(GRAPHS_PER_BLOCK):
            base = g * NODES_PER_GRAPH
            for i in range(NODES_PER_GRAPH - 1):       # undirected chain
                srcs += [base + i, base + i + 1]
                dsts += [base + i + 1, base + i]
            batch += [g] * NODES_PER_GRAPH
        return {
            "x": x,
            "edge_index": jnp.array([srcs, dsts], jnp.int32),
            "batch": jnp.array(batch, jnp.int32),
            "num_graphs": GRAPHS_PER_BLOCK,
        }

    blocks = [make_block(keys[1 + i]) for i in range(NUM_BLOCKS)]

    out = gnn_forward(blocks, params)
    out = jax.block_until_ready(out)
    assert out.shape == (NUM_BLOCKS * GRAPHS_PER_BLOCK, OUT)
    assert bool(jnp.all(jnp.isfinite(out)))

    ref = jnp.concatenate(
        [reference_forward(b["x"], b["edge_index"], b["batch"], b["num_graphs"], params)
         for b in blocks],
        axis=0,
    )
    # bf16 MXU operands -> allow ~1% drift vs the f32 reference.
    assert bool(jnp.allclose(out, ref, rtol=0.1, atol=0.5)), (out, ref)

    print("KERNEL_OK")
</pallas_src>

<mosaic_0001>
module attributes {stable_mosaic.version = 11 : i64} {
  func.func @gnn_forward_kernel(%arg0: i32, %arg1: memref<1x240x1xi32, #tpu.memory_space<vmem>>, %arg2: memref<1x1x240xi32, #tpu.memory_space<vmem>>, %arg3: memref<1x1x128xi32, #tpu.memory_space<vmem>>, %arg4: memref<1x128x8xbf16, #tpu.memory_space<vmem>>, %arg5: memref<8x128xbf16, #tpu.memory_space<vmem>>, %arg6: memref<128x128xbf16, #tpu.memory_space<vmem>>, %arg7: memref<128x128xbf16, #tpu.memory_space<vmem>>, %arg8: memref<128x128xbf16, #tpu.memory_space<vmem>>, %arg9: memref<8x128xf32, #tpu.memory_space<vmem>>, %arg10: memref<1x1x128xf32, #tpu.memory_space<vmem>>) attributes {dimension_semantics = [#tpu.dimension_semantics<parallel>], iteration_bounds = array<i64: 2>, scalar_prefetch = 0 : i64, scratch_operands = 0 : i64, tpu.core_type = #tpu.core_type<tc>, window_params = [{transform_indices = @transform_0, window_bounds = array<i64: 1, 240, 1>}, {transform_indices = @transform_1, window_bounds = array<i64: 1, 1, 240>}, {transform_indices = @transform_2, window_bounds = array<i64: 1, 1, 128>}, {transform_indices = @transform_3, window_bounds = array<i64: 1, 128, 8>}, {pipeline_mode = #tpu.pipeline_mode<synchronous>, transform_indices = @transform_4, window_bounds = array<i64: 8, 128>}, {pipeline_mode = #tpu.pipeline_mode<synchronous>, transform_indices = @transform_5, window_bounds = array<i64: 128, 128>}, {pipeline_mode = #tpu.pipeline_mode<synchronous>, transform_indices = @transform_6, window_bounds = array<i64: 128, 128>}, {pipeline_mode = #tpu.pipeline_mode<synchronous>, transform_indices = @transform_7, window_bounds = array<i64: 128, 128>}, {pipeline_mode = #tpu.pipeline_mode<synchronous>, transform_indices = @transform_8, window_bounds = array<i64: 8, 128>}, {transform_indices = @transform_9, window_bounds = array<i64: 1, 1, 128>}]} {
    %c0 = arith.constant 0 : index
    %c0_0 = arith.constant 0 : index
    %0 = vector.load %arg9[%c0, %c0_0] : memref<8x128xf32, #tpu.memory_space<vmem>>, vector<1x128xf32>
    %c1 = arith.constant 1 : index
    %c0_1 = arith.constant 0 : index
    %1 = vector.load %arg9[%c1, %c0_1] : memref<8x128xf32, #tpu.memory_space<vmem>>, vector<1x128xf32>
    %c2 = arith.constant 2 : index
    %c0_2 = arith.constant 0 : index
    %2 = vector.load %arg9[%c2, %c0_2] : memref<8x128xf32, #tpu.memory_space<vmem>>, vector<1x128xf32>
    %c3 = arith.constant 3 : index
    %c0_3 = arith.constant 0 : index
    %3 = vector.load %arg9[%c3, %c0_3] : memref<8x128xf32, #tpu.memory_space<vmem>>, vector<1x128xf32>
    %c4 = arith.constant 4 : index
    %c0_4 = arith.constant 0 : index
    %4 = vector.load %arg9[%c4, %c0_4] : memref<8x128xf32, #tpu.memory_space<vmem>>, vector<1x128xf32>
    %c5 = arith.constant 5 : index
    %c0_5 = arith.constant 0 : index
    %5 = vector.load %arg9[%c5, %c0_5] : memref<8x128xf32, #tpu.memory_space<vmem>>, vector<1x128xf32>
    %c6 = arith.constant 6 : index
    %c0_6 = arith.constant 0 : index
    %6 = vector.load %arg9[%c6, %c0_6] : memref<8x128xf32, #tpu.memory_space<vmem>>, vector<1x128xf32>
    %c7 = arith.constant 7 : index
    %c0_7 = arith.constant 0 : index
    %7 = vector.load %arg9[%c7, %c0_7] : memref<8x128xf32, #tpu.memory_space<vmem>>, vector<1x128xf32>
    %8 = vector.extract_strided_slice %7 {offsets = [0, 0], sizes = [1, 1], strides = [1, 1]} : vector<1x128xf32> to vector<1x1xf32>
    %9 = tpu.iota {dimensions = array<i32: 0>} : vector<128x240xi32>
    %10 = tpu.iota {dimensions = array<i32: 1>} : vector<240x128xi32>
    %c0_8 = arith.constant 0 : index
    %c0_9 = arith.constant 0 : index
    %c0_10 = arith.constant 0 : index
    %11 = vector.load %arg2[%c0_8, %c0_9, %c0_10] : memref<1x1x240xi32, #tpu.memory_space<vmem>>, vector<1x1x240xi32>
    %12 = vector.shape_cast %11 : vector<1x1x240xi32> to vector<1x240xi32>
    %13 = vector.broadcast %12 : vector<1x240xi32> to vector<128x240xi32>
    %14 = arith.cmpi eq, %9, %13 : vector<128x240xi32>
    %cst = arith.constant 1.000000e+00 : f32
    %cst_11 = arith.constant 0.000000e+00 : f32
    %15 = vector.broadcast %cst : f32 to vector<128x240xf32>
    %16 = vector.broadcast %cst_11 : f32 to vector<128x240xf32>
    %17 = arith.select %14, %15, %16 : vector<128x240xi1>, vector<128x240xf32>
    %18 = arith.truncf %17 : vector<128x240xf32> to vector<128x240xbf16>
    %c0_12 = arith.constant 0 : index
    %c0_13 = arith.constant 0 : index
    %c0_14 = arith.constant 0 : index
    %19 = vector.load %arg1[%c0_12, %c0_13, %c0_14] : memref<1x240x1xi32, #tpu.memory_space<vmem>>, vector<1x240x1xi32>
    %20 = vector.shape_cast %19 : vector<1x240x1xi32> to vector<240x1xi32>
    %21 = vector.broadcast %20 : vector<240x1xi32> to vector<240x128xi32>
    %22 = arith.cmpi eq, %10, %21 : vector<240x128xi32>
    %cst_15 = arith.constant 1.000000e+00 : f32
    %cst_16 = arith.constant 0.000000e+00 : f32
    %23 = vector.broadcast %cst_15 : f32 to vector<240x128xf32>
    %24 = vector.broadcast %cst_16 : f32 to vector<240x128xf32>
    %25 = arith.select %22, %23, %24 : vector<240x128xi1>, vector<240x128xf32>
    %26 = arith.truncf %25 : vector<240x128xf32> to vector<240x128xbf16>
    %cst_17 = arith.constant dense<0.000000e+00> : vector<128x128xf32>
    %27 = tpu.matmul %18, %26, %cst_17 {dimension_numbers = #tpu.dot_dimension_numbers<[1], [0], [0], [1], [0, 0, 1, 1], [], []>} : vector<128x240xbf16>, vector<240x128xbf16>, vector<128x128xf32> -> vector<128x128xf32>
    %28 = tpu.iota {dimensions = array<i32: 0>} : vector<128x128xi32>
    %29 = tpu.iota {dimensions = array<i32: 1>} : vector<128x128xi32>
    %30 = arith.cmpi eq, %28, %29 : vector<128x128xi32>
    %cst_18 = arith.constant 1.000000e+00 : f32
    %cst_19 = arith.constant 0.000000e+00 : f32
    %31 = vector.broadcast %cst_18 : f32 to vector<128x128xf32>
    %32 = vector.broadcast %cst_19 : f32 to vector<128x128xf32>
    %33 = arith.select %30, %31, %32 : vector<128x128xi1>, vector<128x128xf32>
    %34 = arith.addf %27, %33 : vector<128x128xf32>
    %35 = arith.truncf %34 : vector<128x128xf32> to vector<128x128xbf16>
    %cst_20 = arith.constant dense<0.000000e+00> : vector<128xf32>
    %36 = vector.multi_reduction <add>, %34, %cst_20 [1] : vector<128x128xf32> to vector<128xf32>
    %37 = vector.shape_cast %36 : vector<128xf32> to vector<128x1xf32>
    %38 = math.rsqrt %37 : vector<128x1xf32>
    %39 = tpu.iota {dimensions = array<i32: 0>} : vector<128x128xi32>
    %c0_21 = arith.constant 0 : index
    %c0_22 = arith.constant 0 : index
    %c0_23 = arith.constant 0 : index
    %40 = vector.load %arg3[%c0_21, %c0_22, %c0_23] : memref<1x1x128xi32, #tpu.memory_space<vmem>>, vector<1x1x128xi32>
    %41 = vector.shape_cast %40 : vector<1x1x128xi32> to vector<1x128xi32>
    %42 = vector.broadcast %41 : vector<1x128xi32> to vector<128x128xi32>
    %43 = arith.cmpi eq, %39, %42 : vector<128x128xi32>
    %cst_24 = arith.constant 1.000000e+00 : f32
    %cst_25 = arith.constant 0.000000e+00 : f32
    %44 = vector.broadcast %cst_24 : f32 to vector<128x128xf32>
    %45 = vector.broadcast %cst_25 : f32 to vector<128x128xf32>
    %46 = arith.select %43, %44, %45 : vector<128x128xi1>, vector<128x128xf32>
    %cst_26 = arith.constant dense<0.000000e+00> : vector<128xf32>
    %47 = vector.multi_reduction <add>, %46, %cst_26 [1] : vector<128x128xf32> to vector<128xf32>
    %48 = vector.shape_cast %47 : vector<128xf32> to vector<128x1xf32>
    %cst_27 = arith.constant 1.000000e+00 : f32
    %49 = vector.broadcast %cst_27 : f32 to vector<128x1xf32>
    %50 = arith.maximumf %48, %49 : vector<128x1xf32>
    %51 = tpu.reciprocal %50 {approx = true} : vector<128x1xf32> -> vector<128x1xf32>
    %c0_28 = arith.constant 0 : index
    %c0_29 = arith.constant 0 : index
    %c0_30 = arith.constant 0 : index
    %52 = vector.load %arg4[%c0_28, %c0_29, %c0_30] : memref<1x128x8xbf16, #tpu.memory_space<vmem>>, vector<1x128x8xbf16>
    %53 = vector.shape_cast %52 : vector<1x128x8xbf16> to vector<128x8xbf16>
    %c0_31 = arith.constant 0 : index
    %c0_32 = arith.constant 0 : index
    %54 = vector.load %arg5[%c0_31, %c0_32] : memref<8x128xbf16, #tpu.memory_space<vmem>>, vector<8x128xbf16>
    %cst_33 = arith.constant dense<0.000000e+00> : vector<128x128xf32>
    %55 = tpu.matmul %53, %54, %cst_33 {dimension_numbers = #tpu.dot_dimension_numbers<[1], [0], [0], [1], [0, 0, 1, 1], [], []>} : vector<128x8xbf16>, vector<8x128xbf16>, vector<128x128xf32> -> vector<128x128xf32>
    %56 = vector.broadcast %0 : vector<1x128xf32> to vector<128x128xf32>
    %57 = arith.addf %55, %56 : vector<128x128xf32>
    %cst_34 = arith.constant 0.000000e+00 : f32
    %58 = vector.broadcast %cst_34 : f32 to vector<128x128xf32>
    %59 = arith.maximumf %57, %58 : vector<128x128xf32>
    %60 = tpu.iota {dimensions = array<i32: 1>} : vector<1x128xi32>
    %c48_i32 = arith.constant 48 : i32
    %61 = vector.broadcast %c48_i32 : i32 to vector<1x128xi32>
    %62 = arith.cmpi slt, %60, %61 : vector<1x128xi32>
    %63 = arith.extui %62 : vector<1x128xi1> to vector<1x128xi32>
    %64 = arith.sitofp %63 : vector<1x128xi32> to vector<1x128xf32>
    %cst_35 = arith.constant dense<0.000000e+00> : vector<128xf32>
    %65 = vector.multi_reduction <add>, %59, %cst_35 [1] : vector<128x128xf32> to vector<128xf32>
    %66 = vector.shape_cast %65 : vector<128xf32> to vector<128x1xf32>
    %cst_36 = arith.constant 0.020833334 : f32
    %67 = vector.broadcast %cst_36 : f32 to vector<128x1xf32>
    %68 = arith.mulf %66, %67 : vector<128x1xf32>
    %69 = vector.broadcast %68 : vector<128x1xf32> to vector<128x128xf32>
    %70 = arith.subf %59, %69 : vector<128x128xf32>
    %71 = vector.broadcast %64 : vector<1x128xf32> to vector<128x128xf32>
    %72 = arith.mulf %70, %71 : vector<128x128xf32>
    %73 = arith.mulf %72, %72 : vector<128x128xf32>
    %cst_37 = arith.constant dense<0.000000e+00> : vector<128xf32>
    %74 = vector.multi_reduction <add>, %73, %cst_37 [1] : vector<128x128xf32> to vector<128xf32>
    %75 = vector.shape_cast %74 : vector<128xf32> to vector<128x1xf32>
    %cst_38 = arith.constant 0.020833334 : f32
    %76 = vector.broadcast %cst_38 : f32 to vector<128x1xf32>
    %77 = arith.mulf %75, %76 : vector<128x1xf32>
    %cst_39 = arith.constant 9.99999974E-6 : f32
    %78 = vector.broadcast %cst_39 : f32 to vector<128x1xf32>
    %79 = arith.addf %77, %78 : vector<128x1xf32>
    %80 = math.rsqrt %79 : vector<128x1xf32>
    %81 = vector.broadcast %80 : vector<128x1xf32> to vector<128x128xf32>
    %82 = arith.mulf %72, %81 : vector<128x128xf32>
    %83 = vector.broadcast %1 : vector<1x128xf32> to vector<128x128xf32>
    %84 = arith.mulf %82, %83 : vector<128x128xf32>
    %85 = vector.broadcast %2 : vector<1x128xf32> to vector<128x128xf32>
    %86 = arith.addf %84, %85 : vector<128x128xf32>
    %87 = arith.truncf %86 : vector<128x128xf32> to vector<128x128xbf16>
    %c0_40 = arith.constant 0 : index
    %c0_41 = arith.constant 0 : index
    %88 = vector.load %arg6[%c0_40, %c0_41] : memref<128x128xbf16, #tpu.memory_space<vmem>>, vector<128x128xbf16>
    %cst_42 = arith.constant dense<0.000000e+00> : vector<128x128xf32>
    %89 = tpu.matmul %87, %88, %cst_42 {dimension_numbers = #tpu.dot_dimension_numbers<[1], [0], [0], [1], [0, 0, 1, 1], [], []>} : vector<128x128xbf16>, vector<128x128xbf16>, vector<128x128xf32> -> vector<128x128xf32>
    %90 = vector.broadcast %38 : vector<128x1xf32> to vector<128x128xf32>
    %91 = arith.mulf %90, %89 : vector<128x128xf32>
    %92 = arith.truncf %91 : vector<128x128xf32> to vector<128x128xbf16>
    %cst_43 = arith.constant dense<0.000000e+00> : vector<128x128xf32>
    %93 = tpu.matmul %35, %92, %cst_43 {dimension_numbers = #tpu.dot_dimension_numbers<[1], [0], [0], [1], [0, 0, 1, 1], [], []>} : vector<128x128xbf16>, vector<128x128xbf16>, vector<128x128xf32> -> vector<128x128xf32>
    %94 = vector.broadcast %38 : vector<128x1xf32> to vector<128x128xf32>
    %95 = arith.mulf %94, %93 : vector<128x128xf32>
    %96 = vector.broadcast %3 : vector<1x128xf32> to vector<128x128xf32>
    %97 = arith.addf %95, %96 : vector<128x128xf32>
    %cst_44 = arith.constant 0.000000e+00 : f32
    %98 = vector.broadcast %cst_44 : f32 to vector<128x128xf32>
    %99 = arith.maximumf %97, %98 : vector<128x128xf32>
    %100 = arith.truncf %99 : vector<128x128xf32> to vector<128x128xbf16>
    %c0_45 = arith.constant 0 : index
    %c0_46 = arith.constant 0 : index
    %101 = vector.load %arg7[%c0_45, %c0_46] : memref<128x128xbf16, #tpu.memory_space<vmem>>, vector<128x128xbf16>
    %cst_47 = arith.constant dense<0.000000e+00> : vector<128x128xf32>
    %102 = tpu.matmul %100, %101, %cst_47 {dimension_numbers = #tpu.dot_dimension_numbers<[1], [0], [0], [1], [0, 0, 1, 1], [], []>} : vector<128x128xbf16>, vector<128x128xbf16>, vector<128x128xf32> -> vector<128x128xf32>
    %103 = vector.broadcast %38 : vector<128x1xf32> to vector<128x128xf32>
    %104 = arith.mulf %103, %102 : vector<128x128xf32>
    %105 = arith.truncf %104 : vector<128x128xf32> to vector<128x128xbf16>
    %cst_48 = arith.constant dense<0.000000e+00> : vector<128x128xf32>
    %106 = tpu.matmul %35, %105, %cst_48 {dimension_numbers = #tpu.dot_dimension_numbers<[1], [0], [0], [1], [0, 0, 1, 1], [], []>} : vector<128x128xbf16>, vector<128x128xbf16>, vector<128x128xf32> -> vector<128x128xf32>
    %107 = vector.broadcast %38 : vector<128x1xf32> to vector<128x128xf32>
    %108 = arith.mulf %107, %106 : vector<128x128xf32>
    %109 = vector.broadcast %4 : vector<1x128xf32> to vector<128x128xf32>
    %110 = arith.addf %108, %109 : vector<128x128xf32>
    %cst_49 = arith.constant 0.000000e+00 : f32
    %111 = vector.broadcast %cst_49 : f32 to vector<128x128xf32>
    %112 = arith.maximumf %110, %111 : vector<128x128xf32>
    %113 = arith.truncf %46 : vector<128x128xf32> to vector<128x128xbf16>
    %114 = arith.truncf %112 : vector<128x128xf32> to vector<128x128xbf16>
    %cst_50 = arith.constant dense<0.000000e+00> : vector<128x128xf32>
    %115 = tpu.matmul %113, %114, %cst_50 {dimension_numbers = #tpu.dot_dimension_numbers<[1], [0], [0], [1], [0, 0, 1, 1], [], []>} : vector<128x128xbf16>, vector<128x128xbf16>, vector<128x128xf32> -> vector<128x128xf32>
    %116 = vector.broadcast %51 : vector<128x1xf32> to vector<128x128xf32>
    %117 = arith.mulf %115, %116 : vector<128x128xf32>
    %118 = arith.truncf %117 : vector<128x128xf32> to vector<128x128xbf16>
    %c0_51 = arith.constant 0 : index
    %c0_52 = arith.constant 0 : index
    %119 = vector.load %arg8[%c0_51, %c0_52] : memref<128x128xbf16, #tpu.memory_space<vmem>>, vector<128x128xbf16>
    %cst_53 = arith.constant dense<0.000000e+00> : vector<128x128xf32>
    %120 = tpu.matmul %118, %119, %cst_53 {dimension_numbers = #tpu.dot_dimension_numbers<[1], [0], [0], [1], [0, 0, 1, 1], [], []>} : vector<128x128xbf16>, vector<128x128xbf16>, vector<128x128xf32> -> vector<128x128xf32>
    %121 = vector.broadcast %5 : vector<1x128xf32> to vector<128x128xf32>
    %122 = arith.addf %120, %121 : vector<128x128xf32>
    %cst_54 = arith.constant 0.000000e+00 : f32
    %123 = vector.broadcast %cst_54 : f32 to vector<128x128xf32>
    %124 = arith.maximumf %122, %123 : vector<128x128xf32>
    %125 = arith.truncf %6 : vector<1x128xf32> to vector<1x128xbf16>
    %126 = arith.truncf %124 : vector<128x128xf32> to vector<128x128xbf16>
    %127 = tpu.transpose %126, [1, 0] : vector<128x128xbf16> -> vector<128x128xbf16>
    %cst_55 = arith.constant dense<0.000000e+00> : vector<1x128xf32>
    %128 = tpu.matmul %125, %127, %cst_55 {dimension_numbers = #tpu.dot_dimension_numbers<[1], [0], [0], [1], [0, 0, 1, 1], [], []>} : vector<1x128xbf16>, vector<128x128xbf16>, vector<1x128xf32> -> vector<1x128xf32>
    %129 = vector.broadcast %8 : vector<1x1xf32> to vector<1x128xf32>
    %130 = arith.addf %128, %129 : vector<1x128xf32>
    %c0_56 = arith.constant 0 : index
    %c0_57 = arith.constant 0 : index
    %c0_58 = arith.constant 0 : index
    %131 = vector.load %arg10[%c0_56, %c0_57, %c0_58] : memref<1x1x128xf32, #tpu.memory_space<vmem>>, vector<1x1x128xf32>
    %132 = vector.shape_cast %131 : vector<1x1x128xf32> to vector<1x128xf32>
    %133 = vector.shape_cast %130 : vector<1x128xf32> to vector<1x1x128xf32>
    tpu.vector_store %arg10[%c0_56, %c0_57, %c0_58], %133 {strides = array<i32>} : memref<1x1x128xf32, #tpu.memory_space<vmem>>, vector<1x1x128xf32>,
    return
  }
  func.func @transform_0(%arg0: i32) -> (i32, i32, i32) {
    %c0_i32 = arith.constant 0 : i32
    %c0_i32_0 = arith.constant 0 : i32
    %c0_i32_1 = arith.constant 0 : i32
    return %arg0, %c0_i32, %c0_i32_0 : i32, i32, i32
  }
  func.func @transform_1(%arg0: i32) -> (i32, i32, i32) {
    %c0_i32 = arith.constant 0 : i32
    %c0_i32_0 = arith.constant 0 : i32
    %c0_i32_1 = arith.constant 0 : i32
    return %arg0, %c0_i32, %c0_i32_0 : i32, i32, i32
  }
  func.func @transform_2(%arg0: i32) -> (i32, i32, i32) {
    %c0_i32 = arith.constant 0 : i32
    %c0_i32_0 = arith.constant 0 : i32
    %c0_i32_1 = arith.constant 0 : i32
    return %arg0, %c0_i32, %c0_i32_0 : i32, i32, i32
  }
  func.func @transform_3(%arg0: i32) -> (i32, i32, i32) {
    %c0_i32 = arith.constant 0 : i32
    %c0_i32_0 = arith.constant 0 : i32
    %c0_i32_1 = arith.constant 0 : i32
    return %arg0, %c0_i32, %c0_i32_0 : i32, i32, i32
  }
  func.func @transform_4(%arg0: i32) -> (i32, i32) {
    %c0_i32 = arith.constant 0 : i32
    %c0_i32_0 = arith.constant 0 : i32
    %c0_i32_1 = arith.constant 0 : i32
    return %c0_i32, %c0_i32_0 : i32, i32
  }
  func.func @transform_5(%arg0: i32) -> (i32, i32) {
    %c0_i32 = arith.constant 0 : i32
    %c0_i32_0 = arith.constant 0 : i32
    %c0_i32_1 = arith.constant 0 : i32
    return %c0_i32, %c0_i32_0 : i32, i32
  }
  func.func @transform_6(%arg0: i32) -> (i32, i32) {
    %c0_i32 = arith.constant 0 : i32
    %c0_i32_0 = arith.constant 0 : i32
    %c0_i32_1 = arith.constant 0 : i32
    return %c0_i32, %c0_i32_0 : i32, i32
  }
  func.func @transform_7(%arg0: i32) -> (i32, i32) {
    %c0_i32 = arith.constant 0 : i32
    %c0_i32_0 = arith.constant 0 : i32
    %c0_i32_1 = arith.constant 0 : i32
    return %c0_i32, %c0_i32_0 : i32, i32
  }
  func.func @transform_8(%arg0: i32) -> (i32, i32) {
    %c0_i32 = arith.constant 0 : i32
    %c0_i32_0 = arith.constant 0 : i32
    %c0_i32_1 = arith.constant 0 : i32
    return %c0_i32, %c0_i32_0 : i32, i32
  }
  func.func @transform_9(%arg0: i32) -> (i32, i32, i32) {
    %c0_i32 = arith.constant 0 : i32
    %c0_i32_0 = arith.constant 0 : i32
    %c0_i32_1 = arith.constant 0 : i32
    return %arg0, %c0_i32, %c0_i32_0 : i32, i32, i32
  }
}

</mosaic_0001>

<bundles_post_ra>
// kernel: tpu_custom_call.1
= control target key start
LH: loop header
LB: loop body
LE: loop exit
PB: predicated region body
PF: predicated region fallthrough
CT: control target
= control target key end

     0   :  { %14 = vsyncpa [#allocation3], 0  ;;  %s4523_s0 = inlined_call_operand.vmem [shape: s32[2,240,1], index: 0, kind: input, shape index: {}]   ;;  %s4524_s1 = inlined_call_operand.vmem [shape: s32[2,1,240], index: 1, kind: input, shape index: {}]   ;;  %s4525_s2 = inlined_call_operand.vmem [shape: s32[2,1,128], index: 2, kind: input, shape index: {}]   ;;  %s4526_s3 = inlined_call_operand.vmem [shape: bf16[2,128,8], index: 3, kind: input, shape index: {}]   ;;  %s4527_s4 = inlined_call_operand.vmem [shape: bf16[8,128], index: 4, kind: input, shape index: {}]   ;;  %s4528_s5 = inlined_call_operand.vmem [shape: bf16[128,128], index: 5, kind: input, shape index: {}]   ;;  %s4529_s6 = inlined_call_operand.vmem [shape: bf16[128,128], index: 6, kind: input, shape index: {}]   ;;  %s4530_s7 = inlined_call_operand.vmem [shape: bf16[128,128], index: 7, kind: input, shape index: {}]   ;;  %s4531_s8 = inlined_call_operand.vmem [shape: f32[8,128], index: 8, kind: input, shape index: {}]   ;;  %s4532_s9 = inlined_call_operand.hbm [shape: f32[2,1,128], index: 9, kind: output, shape index: {}]  }
   0x1   :  { %16 = vsyncpa [#allocation3 + $0x1], 0  ;;  %s3366_s30 = smov 0   ;;  %s3368_s10 = smov 0  }
   0x2   :  { %s3370_s11 = smov 0   ;;  %s3372_s12 = smov 0  }
   0x3 LB: > { %s3387_s13 = sadd.s32 4294967295, %s3309_s12   ;;  %s2600_s14 = sadd.s32 4294967294, %s3309_s12   ;;  %s3309_s12 = sphi %s3372_s12, %s4553_s12   ;;  %s3305_s11 = sphi %s3370_s11, %s4552_s11   ;;  %s3301_s10 = sphi %s3368_s10, %s4551_s10   ;;  %s3297_s30 = sphi %s3366_s30, %s4550_s30  }
   0x4   : > { %s3391_s15 = sadd.s32 1, %s3309_s12   ;;  %s238_s16 = sadd.s32 1, %s3305_s11 }
   0x5   : > { %s235_s17 = ssub.s32 %s3309_s12, %s3391_s15  ;;  %p248_p0 = scmp.ne.s32.totalorder %s3305_s11, %s3301_s10 }
   0x6   : > { %p236_p1 = scmp.eq.s32.totalorder %s235_s17, 0  ;;  %p249_p2 = scmp.eq.s32.totalorder %s3387_s13, 1 }
   0x7   : > { %p254_p3 = scmp.ne.s32.totalorder %s3301_s10, %s3297_s30  ;;  %p255_p4 = scmp.eq.s32.totalorder %s2600_s14, 1 }
   0x8   : > { %s3402_s18 = scalar_select %p236_p1, %s3305_s11, %s238_s16  }
   0x9   : > { %p3404_p5 = por %p249_p2, %p248_p0  ;;  %p3408_p6 = por %p255_p4, %p254_p3 }
   0xa   : > { %p2603_p7 = scmp.ge.s32.totalorder %s3309_s12, 1  ;;  %p317_p8 = scmp.lt.s32.totalorder %s3309_s12, 3 }
   0xc   : > { %p318_p9 = pnand %p2603_p7, %p317_p8 }
   0xe   : > { %321 = sbr.rel (%p318_p9) target bundleno = 2232 (0x8b8), region = 56 }
  0x13   : > { %v1020_v0 = vld [vmem:[%s4527_s4] sm:$0xf]  ;;  %vm1090_vm0 = vcmask 1043456   ;;  %p364_p10 = scmp.lt.s32.totalorder %s3387_s13, 1  ;;  %v3311_v2 = vmov 0   ;;  %vm1065_vm1 = vcmask 64512   ;;  %v390_v38 = vlaneseq }
  0x14   : > { %3074 = vmatprep.subr.msk.bf16.mxu1 %vm1090_vm0, %v1020_v0  ;;  %v1092_v1 = vsel %vm1090_vm0, %v1020_v0, 0  ;;  %3119 = vset.pattern.permute.xlu0 %v3311_v2  ;;  %v3312_v47 = vmov 0.0   ;;  %vm725_vm4 = vcmask 916480   ;;  %v4533_v56 = vmov 1.0|1.0   ;;  %s362_s21 = sand.u32 1, %s3301_s10  }
  0x15   : > { %2845 = vmatpush3.bf16.msra.mxu1 %v1092_v1  ;;  %s3420_s23 = scalar_select %p364_p10, %s3387_s13, 1  ;;  %3120 = vset.pattern.permute.xlu1 %v3311_v2  ;;  %v3480_v40 = vshrl.u32 %v390_v38, 7  ;;  %v3504_v51 = vand.u32 127, %v390_v38 }
  0x16   : > { %750 = vmatprep.subr.bf16.mxu0 %v3311_v2  ;;  %s3315_s29 = smov [#allocation2]  }
  0x17   : > { %s3075_s24 = smul.u32 240, %s3420_s23  ;;  %s2729_s25 = sshll.u32 %s3420_s23, 6  ;;  %v416_v42 = vsub.s32 1, %v3480_v40  ;;  %v3492_v45 = vadd.s32 8, %v3480_v40 }
  0x18   : > { %s3429_s28 = scalar_lea.vmem %s4526_s3, %s2729_s25  ;;  %s2605_s17 = sshll.u32 %s3420_s23, 1 }
  0x19   : > { %s3434_s16 = scalar_lea.vmem %s4523_s0, %s3075_s24  ;;  %v3121_v3 = vld [vmem:[%s3429_s28] sm:$0xff]   ;;  %v3122_v5 = vld [vmem:[%s3429_s28 + $0x8] sm:$0xff]   ;;  %v3123_v9 = vld [vmem:[%s3429_s28 + $0x10] sm:$0xff]   ;;  %s372_s24 = scalar_lea.vmem %s4524_s1, %s2605_s17 }
  0x1a   : > { %v512_v4 = vld [vmem:[%s3434_s16 + $0x70] sm:$0xff]  ;;  %2846 = vmatprep.mubr.msk.bf16.mxu1 %vm1065_vm1, %v3121_v3  ;;  %v513_v6 = vld [vmem:[%s3434_s16 + $0x78] sm:$0xff]  ;;  %v510_v7 = vld [vmem:[%s3434_s16 + $0x60] sm:$0xff]  ;;  %s375_s22 = scalar_lea.vmem %s4525_s2, %s3420_s23  ;;  %s363_s23 = scalar_lea.vmem [#allocation2], %s362_s21 }
  0x1b   : > { %571 = vperm.xlu0 %3119, %v512_v4   ;;  %565 = vperm.xlu1 %3120, %v510_v7   ;;  %v511_v8 = vld [vmem:[%s3434_s16 + $0x68] sm:$0xff]  ;;  %v508_v10 = vld [vmem:[%s3434_s16 + $0x50] sm:$0xff]  ;;  %v3124_v11 = vld [vmem:[%s3429_s28 + $0x18] sm:$0xff]   ;;  %s3253_s14 = sshll.u32 %s3315_s29, 4  ;;  %s3254_s14 = int_to_ptr.vmem [resolvable:$false] %s3253_s14 }
  0x1c   : > { %2847 = vmatmul.mubr.msk.bf16.vlgmr.msra.gmra.mxu1 %vm1065_vm1, %v3122_v5  ;;  %v509_v12 = vld [vmem:[%s3434_s16 + $0x58] sm:$0xff]  ;;  %v3125_v13 = vld [vmem:[%s3429_s28 + $0x20] sm:$0xff]   ;;  %v507_v15 = vld [vmem:[%s3434_s16 + $0x48] sm:$0xff] }
  0x1d   : > { %2850 = vmatprep.mubr.msk.bf16.mxu1 %vm1065_vm1, %v3123_v9  ;;  %v506_v14 = vld [vmem:[%s3434_s16 + $0x40] sm:$0xff]  ;;  %v504_v16 = vld [vmem:[%s3434_s16 + $0x30] sm:$0xff]  ;;  %v3126_v17 = vld [vmem:[%s3429_s28 + $0x28] sm:$0xff]  }
  0x1e   : > { %v505_v18 = vld [vmem:[%s3434_s16 + $0x38] sm:$0xff]  ;;  %v502_v19 = vld [vmem:[%s3434_s16 + $0x20] sm:$0xff]  ;;  %v3127_v20 = vld [vmem:[%s3429_s28 + $0x30] sm:$0xff]  }
  0x1f   : > { %574 = vperm.xlu0 %3119, %v513_v6   ;;  %568 = vperm.xlu1 %3120, %v511_v8   ;;  %v503_v21 = vld [vmem:[%s3434_s16 + $0x28] sm:$0xff]  ;;  %v500_v22 = vld [vmem:[%s3434_s16 + $0x10] sm:$0xff]  ;;  %v3128_v23 = vld [vmem:[%s3429_s28 + $0x38] sm:$0xff]   ;;  %s2500_s28 = scalar_lea.sflag [#allocation3], %s362_s21 }
  0x20   : > { %v501_v24 = vld [vmem:[%s3434_s16 + $0x18] sm:$0xff]  ;;  %v498_v25 = vld [vmem:[%s3434_s16] sm:$0xff]  ;;  %v499_v26 = vld [vmem:[%s3434_s16 + $0x8] sm:$0xff] }
  0x21   : > { %v526_v27 = vld [vmem:[%s3434_s16 + $0xe0] sm:$0xff]  ;;  %v527_v28 = vld [vmem:[%s3434_s16 + $0xe8] sm:$0xff]  ;;  %v524_v29 = vld [vmem:[%s3434_s16 + $0xd0] sm:$0xff] }
  0x22   : > { %v525_v30 = vld [vmem:[%s3434_s16 + $0xd8] sm:$0xff]  ;;  %v522_v31 = vld [vmem:[%s3434_s16 + $0xc0] sm:$0xff]  ;;  %v523_v32 = vld [vmem:[%s3434_s16 + $0xc8] sm:$0xff] }
  0x23   : > { %559 = vperm.xlu0 %3119, %v508_v10   ;;  %562 = vperm.xlu1 %3120, %v509_v12   ;;  %v520_v33 = vld [vmem:[%s3434_s16 + $0xb0] sm:$0xff]  ;;  %v521_v34 = vld [vmem:[%s3434_s16 + $0xb8] sm:$0xff]  ;;  %v518_v35 = vld [vmem:[%s3434_s16 + $0xa0] sm:$0xff] }
  0x24   : > { %2851 = vmatmul.mubr.msk.bf16.gmra.mxu1 %vm1065_vm1, %v3124_v11  ;;  %v519_v36 = vld [vmem:[%s3434_s16 + $0xa8] sm:$0xff]  ;;  %v516_v37 = vld [vmem:[%s3434_s16 + $0x90] sm:$0xff]  ;;  %v517_v39 = vld [vmem:[%s3434_s16 + $0x98] sm:$0xff] }
  0x25   : > { %2854 = vmatprep.mubr.msk.bf16.mxu1 %vm1065_vm1, %v3125_v13  ;;  %v514_v41 = vld [vmem:[%s3434_s16 + $0x80] sm:$0xff]  ;;  %v515_v43 = vld [vmem:[%s3434_s16 + $0x88] sm:$0xff]  ;;  %s3255_s16 = scalar_lea.vmem %s3254_s14, 32 }
  0x26   : > { %v3489_v44 = vld [vmem:[%s372_s24] sm:$0x3]  ;;  %s2512_s24 = sshll.u32 %s363_s23, 4  ;;  %s4484_s24 = int_to_ptr.vmem [resolvable:$true] %s2512_s24 }
  0x27   : > { %553 = vperm.xlu0 %3119, %v506_v14   ;;  %556 = vperm.xlu1 %3120, %v507_v15   ;;  %v3495_v46 = vrot.slane %v3489_v44, %v416_v42  ;;  %p3256_p0 = scmp.lt.s32.totalorder %s4484_s24, %s3254_s14 }
  0x29   : > { %vm419_vm2 = vcmp.eq.s32.totalorder %v3480_v40, %v3495_v46  ;;  %vm421_vm3 = vcmp.eq.s32.totalorder %v3492_v45, %v3495_v46 }
  0x2a   : > { %v451_v48 = vsel %vm419_vm2, 1.0, %v3312_v47  ;;  %v453_v49 = vsel %vm421_vm3, 1.0, %v3312_v47 }
  0x2b   : > { %547 = vperm.xlu0 %3119, %v504_v16   ;;  %550 = vperm.xlu1 %3120, %v505_v18   ;;  %v483_v50 = vpack.c.bf16 %v453_v49, %v451_v48  ;;  %v3639_v48 = vadd.s32 64, %v3480_v40  ;;  %v3642_v49 = vadd.s32 72, %v3480_v40 }
  0x2c   : > { %2855 = vmatmul.mubr.msk.bf16.gmra.mxu1 %vm1065_vm1, %v3126_v17  ;;  %v412_v17 = vsub.s32 0, %v3480_v40 }
  0x2d   : > { %2858 = vmatprep.mubr.msk.bf16.mxu1 %vm1065_vm1, %v3127_v20  ;;  %2638 = vmatprep.mubr.msk.bf16.mxu0 %vm725_vm4, %v483_v50  ;;  %v3562_v20 = vadd.s32 24, %v3480_v40  ;;  %4543 = vst [vmem:[#allocation5_spill] sm:$0xff] %v3642_v49 }
  0x2f   : > { %541 = vperm.xlu0 %3119, %v502_v19   ;;  %544 = vperm.xlu1 %3120, %v503_v21   ;;  %v3559_v19 = vadd.s32 16, %v3480_v40 }
  0x33   : > { %535 = vperm.xlu0 %3119, %v500_v22   ;;  %538 = vperm.xlu1 %3120, %v501_v24   ;;  %v3568_v22 = vrot.slane %v3489_v44, %v412_v17 }
  0x34   : > { %2859 = vmatmul.mubr.msk.bf16.gmra.mxu1 %vm1065_vm1, %v3128_v23 }
  0x37   : > { %529 = vperm.xlu0 %3119, %v498_v25   ;;  %532 = vperm.xlu1 %3120, %v499_v26   ;;  %v3585_v26 = vadd.s32 32, %v3480_v40 }
  0x3b   : > { %613 = vperm.xlu0 %3119, %v526_v27   ;;  %616 = vperm.xlu1 %3120, %v527_v28   ;;  %v3588_v27 = vadd.s32 40, %v3480_v40 }
  0x3f   : > { %607 = vperm.xlu0 %3119, %v524_v29   ;;  %610 = vperm.xlu1 %3120, %v525_v30   ;;  %v3604_v30 = vadd.s32 48, %v3480_v40 }
  0x43   : > { %601 = vperm.xlu0 %3119, %v522_v31   ;;  %604 = vperm.xlu1 %3120, %v523_v32   ;;  %v3607_v31 = vadd.s32 56, %v3480_v40 }
  0x47   : > { %595 = vperm.xlu0 %3119, %v520_v33   ;;  %598 = vperm.xlu1 %3120, %v521_v34   ;;  %v3612_v34 = vld [vmem:[%s4531_s8] ss:$0 sm:$0xff] }
  0x4b   : > { %589 = vperm.xlu0 %3119, %v518_v35   ;;  %592 = vperm.xlu1 %3120, %v519_v36  }
  0x4f   : > { %583 = vperm.xlu0 %3119, %v516_v37   ;;  %586 = vperm.xlu1 %3120, %v517_v39  }
  0x53   : > { %577 = vperm.xlu0 %3119, %v514_v41   ;;  %580 = vperm.xlu1 %3120, %v515_v43  }
  0x96   : > { %v572_v52 = vpop.permute.xlu0 %571  ;;  %v566_v53 = vpop.permute.xlu1 %565 }
  0x97   : > { %vm632_vm5 = vcmp.eq.s32.totalorder %v3504_v51, %v572_v52  ;;  %vm630_vm7 = vcmp.eq.s32.totalorder %v3504_v51, %v566_v53 }
  0x9a   : > { %v575_v54 = vpop.permute.xlu0 %574  ;;  %v569_v55 = vpop.permute.xlu1 %568 }
  0x9b   : > { %vm633_vm6 = vcmp.eq.s32.totalorder %v3504_v51, %v575_v54  ;;  %vm631_vm9 = vcmp.eq.s32.totalorder %v3504_v51, %v569_v55 }
  0x9c   : > { %vm2608_vm8 = vmpackc.low %vm633_vm6, %vm632_vm5 }
  0x9d   : > { %2609 = vmatpush1.bf16.msk.msra.mxu0 %vm2608_vm8, %v4533_v56  ;;  %vm2610_vm10 = vmpackc.low %vm631_vm9, %vm630_vm7 }
  0x9e   : > { %752 = vmatprep.subr.bf16.mxu0 %v3311_v2  ;;  %v560_v57 = vpop.permute.xlu0 %559  ;;  %v563_v58 = vpop.permute.xlu1 %562 }
  0x9f   : > { %vm628_vm11 = vcmp.eq.s32.totalorder %v3504_v51, %v560_v57  ;;  %vm629_vm12 = vcmp.eq.s32.totalorder %v3504_v51, %v563_v58 }
  0xa0   : > { %vm2612_vm13 = vmpackc.low %vm629_vm12, %vm628_vm11 }
  0xa1   : > { %2611 = vmatpush1.bf16.msk.msra.mxu0 %vm2610_vm10, %v4533_v56 }
  0xa2   : > { %754 = vmatprep.subr.bf16.mxu0 %v3311_v2  ;;  %v554_v59 = vpop.permute.xlu0 %553  ;;  %v557_v60 = vpop.permute.xlu1 %556 }
  0xa3   : > { %vm626_vm14 = vcmp.eq.s32.totalorder %v3504_v51, %v554_v59  ;;  %vm627_vm15 = vcmp.eq.s32.totalorder %v3504_v51, %v557_v60 }
  0xa4   : > { %vm2614_vm0 = vmpackc.low %vm627_vm15, %vm626_vm14 }
  0xa5   : > { %2613 = vmatpush1.bf16.msk.msra.mxu0 %vm2612_vm13, %v4533_v56 }
  0xa6   : > { %756 = vmatprep.subr.bf16.mxu0 %v3311_v2  ;;  %v548_v61 = vpop.permute.xlu0 %547  ;;  %v551_v62 = vpop.permute.xlu1 %550 }
  0xa7   : > { %vm624_vm1 = vcmp.eq.s32.totalorder %v3504_v51, %v548_v61  ;;  %vm625_vm2 = vcmp.eq.s32.totalorder %v3504_v51, %v551_v62 }
  0xa8   : > { %vm2616_vm3 = vmpackc.low %vm625_vm2, %vm624_vm1 }
  0xa9   : > { %2615 = vmatpush1.bf16.msk.msra.mxu0 %vm2614_vm0, %v4533_v56 }
  0xaa   : > { %758 = vmatprep.subr.bf16.mxu0 %v3311_v2  ;;  %v542_v63 = vpop.permute.xlu0 %541  ;;  %v545_v0 = vpop.permute.xlu1 %544 }
  0xab   : > { %vm622_vm5 = vcmp.eq.s32.totalorder %v3504_v51, %v542_v63  ;;  %vm623_vm6 = vcmp.eq.s32.totalorder %v3504_v51, %v545_v0 }
  0xac   : > { %vm2618_vm7 = vmpackc.low %vm623_vm6, %vm622_vm5 }
  0xad   : > { %2617 = vmatpush1.bf16.msk.msra.mxu0 %vm2616_vm3, %v4533_v56 }
  0xae   : > { %760 = vmatprep.subr.bf16.mxu0 %v3311_v2  ;;  %v536_v1 = vpop.permute.xlu0 %535  ;;  %v539_v3 = vpop.permute.xlu1 %538 }
  0xaf   : > { %vm620_vm8 = vcmp.eq.s32.totalorder %v3504_v51, %v536_v1  ;;  %vm621_vm9 = vcmp.eq.s32.totalorder %v3504_v51, %v539_v3 }
  0xb0   : > { %vm2620_vm10 = vmpackc.low %vm621_vm9, %vm620_vm8 }
  0xb1   : > { %2619 = vmatpush1.bf16.msk.msra.mxu0 %vm2618_vm7, %v4533_v56 }
  0xb2   : > { %762 = vmatprep.subr.bf16.mxu0 %v3311_v2  ;;  %v530_v4 = vpop.permute.xlu0 %529  ;;  %v533_v5 = vpop.permute.xlu1 %532 }
  0xb3   : > { %vm618_vm11 = vcmp.eq.s32.totalorder %v3504_v51, %v530_v4  ;;  %vm619_vm12 = vcmp.eq.s32.totalorder %v3504_v51, %v533_v5  ;;  %v3681_v4 = vadd.s32 80, %v3480_v40  ;;  %v3684_v5 = vadd.s32 88, %v3480_v40 }
  0xb4   : > { %vm2622_vm13 = vmpackc.low %vm619_vm12, %vm618_vm11 }
  0xb5   : > { %2621 = vmatpush1.bf16.msk.msra.mxu0 %vm2620_vm10, %v4533_v56  ;;  %4544 = vst [vmem:[#allocation6_spill] sm:$0xff] %v3684_v5 }
  0xb6   : > { %764 = vmatprep.subr.bf16.mxu0 %v3311_v2  ;;  %v614_v6 = vpop.permute.xlu0 %613  ;;  %v617_v7 = vpop.permute.xlu1 %616 }
  0xb7   : > { %vm646_vm14 = vcmp.eq.s32.totalorder %v3504_v51, %v614_v6  ;;  %vm647_vm15 = vcmp.eq.s32.totalorder %v3504_v51, %v617_v7 }
  0xb8   : > { %vm2624_vm0 = vmpackc.low %vm647_vm15, %vm646_vm14 }
  0xb9   : > { %2623 = vmatpush1.bf16.msk.msra.mxu0 %vm2622_vm13, %v4533_v56 }
  0xba   : > { %768 = vmatprep.subr.bf16.mxu0 %v3311_v2  ;;  %v608_v8 = vpop.permute.xlu0 %607  ;;  %v611_v9 = vpop.permute.xlu1 %610 }
  0xbb   : > { %vm644_vm1 = vcmp.eq.s32.totalorder %v3504_v51, %v608_v8  ;;  %vm645_vm2 = vcmp.eq.s32.totalorder %v3504_v51, %v611_v9 }
  0xbc   : > { %vm2626_vm3 = vmpackc.low %vm645_vm2, %vm644_vm1  ;;  %vm423_vm2 = vcmp.eq.s32.totalorder %v3559_v19, %v3495_v46 }
  0xbd   : > { %2625 = vmatpush2.bf16.msk.msra.mxu0 %vm2624_vm0, %v4533_v56  ;;  %v455_v24 = vsel %vm423_vm2, 1.0, %v3312_v47  ;;  %vm428_vm2 = vcmp.eq.s32.totalorder %v3588_v27, %v3568_v22 }
  0xbe   : > { %770 = vmatprep.subr.bf16.mxu0 %v3311_v2  ;;  %v602_v10 = vpop.permute.xlu0 %601  ;;  %v605_v11 = vpop.permute.xlu1 %604 }
  0xbf   : > { %vm642_vm5 = vcmp.eq.s32.totalorder %v3504_v51, %v602_v10  ;;  %vm643_vm6 = vcmp.eq.s32.totalorder %v3504_v51, %v605_v11 }
  0xc0   : > { %vm2628_vm7 = vmpackc.low %vm643_vm6, %vm642_vm5 }
  0xc1   : > { %2627 = vmatpush2.bf16.msk.msra.mxu0 %vm2626_vm3, %v4533_v56  ;;  %vm425_vm3 = vcmp.eq.s32.totalorder %v3562_v20, %v3495_v46 }
  0xc2   : > { %772 = vmatprep.subr.bf16.mxu0 %v3311_v2  ;;  %v596_v12 = vpop.permute.xlu0 %595  ;;  %v599_v13 = vpop.permute.xlu1 %598  ;;  %v457_v25 = vsel %vm425_vm3, 1.0, %v3312_v47 }
  0xc3   : > { %vm640_vm8 = vcmp.eq.s32.totalorder %v3504_v51, %v596_v12  ;;  %vm641_vm9 = vcmp.eq.s32.totalorder %v3504_v51, %v599_v13 }
  0xc4   : > { %vm2630_vm10 = vmpackc.low %vm641_vm9, %vm640_vm8  ;;  %vm420_vm8 = vcmp.eq.s32.totalorder %v3492_v45, %v3568_v22 }
  0xc5   : > { %2629 = vmatpush2.bf16.msk.msra.mxu0 %vm2628_vm7, %v4533_v56  ;;  %vm418_vm7 = vcmp.eq.s32.totalorder %v3480_v40, %v3568_v22 }
  0xc6   : > { %774 = vmatprep.subr.bf16.mxu0 %v3311_v2  ;;  %v590_v14 = vpop.permute.xlu0 %589  ;;  %v593_v15 = vpop.permute.xlu1 %592  ;;  %vm2639_vm9 = vmpackc.low %vm420_vm8, %vm418_vm7  ;;  %vm430_vm7 = vcmp.eq.s32.totalorder %v3604_v30, %v3568_v22  ;;  %vm432_vm8 = vcmp.eq.s32.totalorder %v3607_v31, %v3568_v22 }
  0xc7   : > { %vm638_vm11 = vcmp.eq.s32.totalorder %v3504_v51, %v590_v14  ;;  %vm639_vm12 = vcmp.eq.s32.totalorder %v3504_v51, %v593_v15 }
  0xc8   : > { %vm2632_vm13 = vmpackc.low %vm639_vm12, %vm638_vm11  ;;  %vm429_vm11 = vcmp.eq.s32.totalorder %v3588_v27, %v3495_v46  ;;  %vm422_vm12 = vcmp.eq.s32.totalorder %v3559_v19, %v3568_v22 }
  0xc9   : > { %2631 = vmatpush2.bf16.msk.msra.mxu0 %vm2630_vm10, %v4533_v56  ;;  %vm427_vm10 = vcmp.eq.s32.totalorder %v3585_v26, %v3495_v46  ;;  %v461_v29 = vsel %vm429_vm11, 1.0, %v3312_v47  ;;  %vm441_vm11 = vcmp.eq.s32.totalorder %v3684_v5, %v3495_v46 }
  0xca   : > { %776 = vmatprep.subr.bf16.mxu0 %v3311_v2  ;;  %v584_v16 = vpop.permute.xlu0 %583  ;;  %v587_v18 = vpop.permute.xlu1 %586  ;;  %v459_v28 = vsel %vm427_vm10, 1.0, %v3312_v47  ;;  %vm439_vm10 = vcmp.eq.s32.totalorder %v3681_v4, %v3495_v46 }
  0xcb   : > { %vm636_vm14 = vcmp.eq.s32.totalorder %v3504_v51, %v584_v16  ;;  %vm637_vm15 = vcmp.eq.s32.totalorder %v3504_v51, %v587_v18  ;;  %v487_v33 = vpack.c.bf16 %v461_v29, %v459_v28  ;;  %v471_v18 = vsel %vm439_vm10, 1.0, %v3312_v47 }
  0xcc   : > { %vm2634_vm0 = vmpackc.low %vm637_vm15, %vm636_vm14  ;;  %vm431_vm15 = vcmp.eq.s32.totalorder %v3604_v30, %v3495_v46 }
  0xcd   : > { %2633 = vmatpush2.bf16.msk.msra.mxu0 %vm2632_vm13, %v4533_v56  ;;  %vm424_vm13 = vcmp.eq.s32.totalorder %v3562_v20, %v3568_v22  ;;  %v463_v42 = vsel %vm431_vm15, 1.0, %v3312_v47 }
  0xce   : > { %778 = vmatprep.subr.bf16.mxu0 %v3311_v2  ;;  %v578_v21 = vpop.permute.xlu0 %577  ;;  %v581_v23 = vpop.permute.xlu1 %580  ;;  %vm2642_vm14 = vmpackc.low %vm424_vm13, %vm422_vm12  ;;  %vm434_vm12 = vcmp.eq.s32.totalorder %v3639_v48, %v3568_v22  ;;  %vm436_vm13 = vcmp.eq.s32.totalorder %v3642_v49, %v3568_v22 }
  0xcf   : > { %vm634_vm1 = vcmp.eq.s32.totalorder %v3504_v51, %v578_v21  ;;  %vm635_vm5 = vcmp.eq.s32.totalorder %v3504_v51, %v581_v23  ;;  %v473_v21 = vsel %vm441_vm11, 1.0, %v3312_v47 }
  0xd0   : > { %vm2636_vm6 = vmpackc.low %vm635_vm5, %vm634_vm1  ;;  %vm426_vm1 = vcmp.eq.s32.totalorder %v3585_v26, %v3568_v22  ;;  %vm435_vm5 = vcmp.eq.s32.totalorder %v3639_v48, %v3495_v46 }
  0xd1   : > { %2635 = vmatpush2.bf16.msk.msra.mxu0 %vm2634_vm0, %v4533_v56  ;;  %vm433_vm0 = vcmp.eq.s32.totalorder %v3607_v31, %v3495_v46  ;;  %vm2645_vm3 = vmpackc.low %vm428_vm2, %vm426_vm1  ;;  %v467_v0 = vsel %vm435_vm5, 1.0, %v3312_v47  ;;  %vm438_vm1 = vcmp.eq.s32.totalorder %v3681_v4, %v3568_v22  ;;  %vm440_vm2 = vcmp.eq.s32.totalorder %v3684_v5, %v3568_v22 }
  0xd2   : > { %780 = vmatprep.subr.bf16.mxu0 %v3311_v2  ;;  %v485_v2 = vpack.c.bf16 %v457_v25, %v455_v24  ;;  %v465_v43 = vsel %vm433_vm0, 1.0, %v3312_v47  ;;  %v3723_v24 = vadd.s32 96, %v3480_v40  ;;  %v3726_v25 = vadd.s32 104, %v3480_v40 }
  0xd3   : > { %v489_v55 = vpack.c.bf16 %v465_v43, %v463_v42 }
  0xd4   : > { %4545 = vst [vmem:[#allocation7_spill] sm:$0xff] %v3726_v25  ;;  %vm443_vm15 = vcmp.eq.s32.totalorder %v3723_v24, %v3495_v46  ;;  %vm445_vm0 = vcmp.eq.s32.totalorder %v3726_v25, %v3495_v46 }
  0xd5   : > { %2637 = vmatpush2.bf16.msk.msra.mxu0 %vm2636_vm6, %v4533_v56  ;;  %vm437_vm6 = vcmp.eq.s32.totalorder %v3642_v49, %v3495_v46 }
  0xd6   : > { %v469_v1 = vsel %vm437_vm6, 1.0, %v3312_v47 }
  0xd7   : > { %v491_v10 = vpack.c.bf16 %v469_v1, %v467_v0  ;;  %v3765_v0 = vadd.s32 112, %v3480_v40  ;;  %v3768_v1 = vadd.s32 120, %v3480_v40 }
  0xd8   : > { %2640 = vmatmul.mubr.msk.bf16.vlgmr.msra.gmra.mxu0 %vm2639_vm9, %v4533_v56  ;;  %vm2648_vm9 = vmpackc.low %vm432_vm8, %vm430_vm7  ;;  %vm442_vm7 = vcmp.eq.s32.totalorder %v3723_v24, %v3568_v22  ;;  %vm444_vm8 = vcmp.eq.s32.totalorder %v3726_v25, %v3568_v22 }
  0xd9   : > { %2641 = vmatprep.mubr.msk.bf16.mxu0 %vm725_vm4, %v485_v2  ;;  %vm447_vm5 = vcmp.eq.s32.totalorder %v3765_v0, %v3495_v46  ;;  %vm449_vm6 = vcmp.eq.s32.totalorder %v3768_v1, %v3495_v46  ;;  %vm446_vm10 = vcmp.eq.s32.totalorder %v3765_v0, %v3568_v22  ;;  %vm448_vm11 = vcmp.eq.s32.totalorder %v3768_v1, %v3568_v22 }
  0xdc   : > { %v2848_v32 = vpop.f32.mrf.mxu1 }
  0xdd   : > { %v3624_v38 = vadd.f32 %v2848_v32, %v3612_v34 }
  0xde   : > { %v1128_v35 = vpop.f32.mrf.mxu1 }
  0xdf   : > { %v3615_v36 = vadd.f32 %v3612_v34, %v1128_v35  ;;  %v1193_v52 = vmax.f32 %v3624_v38, 0.0 }
  0xe0   : > { %2643 = vmatmul.mubr.msk.bf16.gmra.mxu0 %vm2642_vm14, %v4533_v56  ;;  %v2849_v37 = vpop.f32.mrf.mxu1  ;;  %vm2651_vm14 = vmpackc.low %vm436_vm13, %vm434_vm12  ;;  %vm1207_vm13 = vcmp.lt.s32.totalorder %v3504_v51, 48 }
  0xe1   : > { %2644 = vmatprep.mubr.msk.bf16.mxu0 %vm725_vm4, %v487_v33  ;;  %v1191_v39 = vmax.f32 %v3615_v36, 0.0  ;;  %v3646_v53 = vadd.f32 %v2849_v37, %v3612_v34  ;;  %v493_v33 = vpack.c.bf16 %v473_v21, %v471_v18  ;;  %v481_v18 = vsel %vm449_vm6, 1.0, %v3312_v47  ;;  %vm2660_vm12 = vmpackc.low %vm448_vm11, %vm446_vm10 }
  0xe2   : > { %v1131_v41 = vpop.f32.mrf.mxu1  ;;  %vm703_vm6 = vcmp.eq.s32.totalorder %v3681_v4, %v3504_v51  ;;  %vm707_vm10 = vcmp.eq.s32.totalorder %v3765_v0, %v3504_v51  ;;  %vm708_vm11 = vcmp.eq.s32.totalorder %v3768_v1, %v3504_v51 }
  0xe3   : > { %v3634_v44 = vadd.f32 %v3612_v34, %v1131_v41  ;;  %1210 = vadd.xlane.f32.xlu0 %v1191_v39  ;;  %v1194_v60 = vmax.f32 %v3646_v53, 0.0 }
  0xe4   : > { %v2852_v50 = vpop.f32.mrf.mxu1 }
  0xe5   : > { %v1192_v54 = vmax.f32 %v3634_v44, 0.0  ;;  %v3663_v61 = vadd.f32 %v2852_v50, %v3612_v34 }
  0xe6   : > { %v1144_v57 = vpop.f32.mrf.mxu1 }
  0xe7   : > { %v3650_v58 = vadd.f32 %v3612_v34, %v1144_v57  ;;  %1212 = vadd.xlane.f32.xlu1 %v1192_v54  ;;  %1214 = vadd.xlane.f32.xlu0 %v1193_v52  ;;  %v1197_v7 = vmax.f32 %v3663_v61, 0.0  ;;  %v475_v57 = vsel %vm443_vm15, 1.0, %v3312_v47  ;;  %vm697_vm15 = vcmp.eq.s32.totalorder %v3585_v26, %v3504_v51 }
  0xe8   : > { %2646 = vmatmul.mubr.msk.bf16.gmra.mxu0 %vm2645_vm3, %v4533_v56  ;;  %v2853_v59 = vpop.f32.mrf.mxu1  ;;  %vm2654_vm3 = vmpackc.low %vm440_vm2, %vm438_vm1  ;;  %vm699_vm1 = vcmp.eq.s32.totalorder %v3604_v30, %v3504_v51  ;;  %vm700_vm2 = vcmp.eq.s32.totalorder %v3607_v31, %v3504_v51 }
  0xe9   : > { %v1195_v62 = vmax.f32 %v3650_v58, 0.0  ;;  %2647 = vmatprep.mubr.msk.bf16.mxu0 %vm725_vm4, %v489_v55  ;;  %v3688_v8 = vadd.f32 %v2853_v59, %v3612_v34  ;;  %v477_v59 = vsel %vm445_vm0, 1.0, %v3312_v47  ;;  %vm698_vm0 = vcmp.eq.s32.totalorder %v3588_v27, %v3504_v51 }
  0xea   : > { %v1147_v63 = vpop.f32.mrf.mxu1 }
  0xeb   : > { %v3674_v3 = vadd.f32 %v3612_v34, %v1147_v63  ;;  %1218 = vadd.xlane.f32.xlu1 %v1195_v62  ;;  %1216 = vadd.xlane.f32.xlu0 %v1194_v60  ;;  %v1198_v14 = vmax.f32 %v3688_v8, 0.0 }
  0xec   : > { %v2856_v6 = vpop.f32.mrf.mxu1 }
  0xed   : > { %v1196_v9 = vmax.f32 %v3674_v3, 0.0  ;;  %v3705_v15 = vadd.f32 %v2856_v6, %v3612_v34 }
  0xee   : > { %v1160_v11 = vpop.f32.mrf.mxu1 }
  0xef   : > { %v3692_v12 = vadd.f32 %v3612_v34, %v1160_v11  ;;  %1222 = vadd.xlane.f32.xlu1 %v1197_v7  ;;  %1220 = vadd.xlane.f32.xlu0 %v1196_v9  ;;  %v1201_v28 = vmax.f32 %v3705_v15, 0.0 }
  0xf0   : > { %2649 = vmatmul.mubr.msk.bf16.gmra.mxu0 %vm2648_vm9, %v4533_v56  ;;  %v2857_v13 = vpop.f32.mrf.mxu1  ;;  %vm2657_vm9 = vmpackc.low %vm444_vm8, %vm442_vm7  ;;  %vm704_vm7 = vcmp.eq.s32.totalorder %v3684_v5, %v3504_v51  ;;  %vm705_vm8 = vcmp.eq.s32.totalorder %v3723_v24, %v3504_v51 }
  0xf1   : > { %v1199_v16 = vmax.f32 %v3692_v12, 0.0  ;;  %2650 = vmatprep.mubr.msk.bf16.mxu0 %vm725_vm4, %v491_v10  ;;  %v3730_v29 = vadd.f32 %v2857_v13, %v3612_v34  ;;  %v495_v13 = vpack.c.bf16 %v477_v59, %v475_v57 }
  0xf2   : > { %v1163_v17 = vpop.f32.mrf.mxu1 }
  0xf3   : > { %v3716_v23 = vadd.f32 %v3612_v34, %v1163_v17  ;;  %1226 = vadd.xlane.f32.xlu1 %v1199_v16  ;;  %1224 = vadd.xlane.f32.xlu0 %v1198_v14  ;;  %v1202_v42 = vmax.f32 %v3730_v29, 0.0  ;;  %v479_v17 = vsel %vm447_vm5, 1.0, %v3312_v47  ;;  %vm702_vm5 = vcmp.eq.s32.totalorder %v3642_v49, %v3504_v51 }
  0xf4   : > { %v2860_v2 = vpop.f32.mrf.mxu1  ;;  %v497_v46 = vpack.c.bf16 %v481_v18, %v479_v17 }
  0xf5   : > { %v1200_v32 = vmax.f32 %v3716_v23, 0.0  ;;  %v3747_v43 = vadd.f32 %v2860_v2, %v3612_v34 }
  0xf6   : > { %v1176_v35 = vpop.f32.mrf.mxu1 }
  0xf7   : > { %v3734_v37 = vadd.f32 %v3612_v34, %v1176_v35  ;;  %1230 = vadd.xlane.f32.xlu1 %v1201_v28  ;;  %1228 = vadd.xlane.f32.xlu0 %v1200_v32  ;;  %v1205_v6 = vmax.f32 %v3747_v43, 0.0 }
  0xf8   : > { %2652 = vmatmul.mubr.msk.bf16.gmra.mxu0 %vm2651_vm14, %v4533_v56  ;;  %v2861_v41 = vpop.f32.mrf.mxu1  ;;  %vm694_vm14 = vcmp.eq.s32.totalorder %v3492_v45, %v3504_v51 }
  0xf9   : > { %v1203_v50 = vmax.f32 %v3734_v37, 0.0  ;;  %2653 = vmatprep.mubr.msk.bf16.mxu0 %vm725_vm4, %v493_v33  ;;  %v3772_v10 = vadd.f32 %v2861_v41, %v3612_v34  ;;  %v3803_v33 = vsel %vm1207_vm13, 1.0, %v3312_v47  ;;  %vm696_vm13 = vcmp.eq.s32.totalorder %v3562_v20, %v3504_v51 }
  0xfa   : > { %v1179_v55 = vpop.f32.mrf.mxu1 }
  0xfb   : > { %v3758_v63 = vadd.f32 %v3612_v34, %v1179_v55  ;;  %1234 = vadd.xlane.f32.xlu1 %v1203_v50  ;;  %1232 = vadd.xlane.f32.xlu0 %v1202_v42  ;;  %v1206_v34 = vmax.f32 %v3772_v10, 0.0 }
  0xfd   : > { %v1204_v11 = vmax.f32 %v3758_v63, 0.0 }
  0xff   : > { %1238 = vadd.xlane.f32.xlu1 %v1205_v6  ;;  %1236 = vadd.xlane.f32.xlu0 %v1204_v11 }
 0x100   : > { %2655 = vmatmul.mubr.msk.bf16.gmra.mxu0 %vm2654_vm3, %v4533_v56  ;;  %vm701_vm3 = vcmp.eq.s32.totalorder %v3639_v48, %v3504_v51 }
 0x101   : > { %2656 = vmatprep.mubr.msk.bf16.mxu0 %vm725_vm4, %v495_v13 }
 0x103   : > { %1240 = vadd.xlane.f32.xlu0 %v1206_v34 }
 0x108   : > { %2658 = vmatmul.mubr.msk.bf16.gmra.mxu0 %vm2657_vm9, %v4533_v56  ;;  %vm706_vm9 = vcmp.eq.s32.totalorder %v3726_v25, %v3504_v51 }
 0x109   : > { %2659 = vmatprep.mubr.msk.bf16.mxu0 %vm725_vm4, %v497_v46  ;;  %vm693_vm4 = vcmp.eq.s32.totalorder %v3480_v40, %v3504_v51 }
 0x110   : > { %2661 = vmatmul.mubr.msk.bf16.gmra.mxu0 %vm2660_vm12, %v4533_v56  ;;  %vm695_vm12 = vcmp.eq.s32.totalorder %v3559_v19, %v3504_v51 }
 0x16c   : > { %v1211_v21 = vpop.xlane.xlu0 %1210 }
 0x16d   : > { %v1242_v2 = vmul.f32 0.020833334, %v1211_v21 }
 0x16f   : > { %v1258_v35 = vsub.f32 %v1191_v39, %v1242_v2 }
 0x170   : > { %v1213_v41 = vpop.xlane.xlu1 %1212  ;;  %v1215_v55 = vpop.xlane.xlu0 %1214 }
 0x171   : > { %v1243_v57 = vmul.f32 0.020833334, %v1213_v41  ;;  %v1244_v59 = vmul.f32 0.020833334, %v1215_v55  ;;  %v3808_v13 = vmul.f32 %v3803_v33, %v1258_v35 }
 0x173   : > { %v1259_v22 = vsub.f32 %v1192_v54, %v1243_v57  ;;  %v1260_v17 = vsub.f32 %v1193_v52, %v1244_v59  ;;  %v1290_v18 = vmul.f32 %v3808_v13, %v3808_v13 }
 0x174   : > { %v1219_v46 = vpop.xlane.xlu1 %1218  ;;  %v1217_v21 = vpop.xlane.xlu0 %1216 }
 0x175   : > { %v1246_v36 = vmul.f32 0.020833334, %v1219_v46  ;;  %v1245_v39 = vmul.f32 0.020833334, %v1217_v21  ;;  %1306 = vadd.xlane.f32.xlu1 %v1290_v18  ;;  %v3817_v2 = vmul.f32 %v3803_v33, %v1259_v22  ;;  %v3820_v35 = vmul.f32 %v3803_v33, %v1260_v17 }
 0x177   : > { %v1262_v44 = vsub.f32 %v1195_v62, %v1246_v36  ;;  %v1261_v38 = vsub.f32 %v1194_v60, %v1245_v39  ;;  %v1291_v52 = vmul.f32 %v3817_v2, %v3817_v2  ;;  %v1292_v54 = vmul.f32 %v3820_v35, %v3820_v35 }
 0x178   : > { %v1223_v41 = vpop.xlane.xlu1 %1222  ;;  %v1221_v55 = vpop.xlane.xlu0 %1220 }
 0x179   : > { %v1248_v57 = vmul.f32 0.020833334, %v1223_v41  ;;  %v1247_v59 = vmul.f32 0.020833334, %v1221_v55  ;;  %1308 = vadd.xlane.f32.xlu0 %v1291_v52  ;;  %1310 = vadd.xlane.f32.xlu1 %v1292_v54  ;;  %v3831_v22 = vmul.f32 %v3803_v33, %v1262_v44  ;;  %v3834_v58 = vmul.f32 %v3803_v33, %v1261_v38  ;;  %v3129_v38 = vld [vmem:[%s4528_s5 + $0x38] sm:$0xff]  }
 0x17a   : > { %2862 = vmatprep.subr.bf16.mxu1 %v3129_v38 }
 0x17b   : > { %v1264_v53 = vsub.f32 %v1197_v7, %v1248_v57  ;;  %v1263_v60 = vsub.f32 %v1196_v9, %v1247_v59  ;;  %v1294_v62 = vmul.f32 %v3831_v22, %v3831_v22  ;;  %v1293_v17 = vmul.f32 %v3834_v58, %v3834_v58  ;;  %2863 = vmatpush3.bf16.msra.mxu1 %v3129_v38 }
 0x17c   : > { %v1227_v18 = vpop.xlane.xlu1 %1226  ;;  %v1225_v46 = vpop.xlane.xlu0 %1224 }
 0x17d   : > { %v1250_v21 = vmul.f32 0.020833334, %v1227_v18  ;;  %v1249_v36 = vmul.f32 0.020833334, %v1225_v46  ;;  %1314 = vadd.xlane.f32.xlu1 %v1294_v62  ;;  %1312 = vadd.xlane.f32.xlu0 %v1293_v17  ;;  %v3845_v39 = vmul.f32 %v3803_v33, %v1264_v53  ;;  %v3848_v61 = vmul.f32 %v3803_v33, %v1263_v60  ;;  %v3130_v62 = vld [vmem:[%s4528_s5 + $0x30] sm:$0xff]  }
 0x17e   : > { %2864 = vmatprep.subr.bf16.mxu1 %v3130_v62 }
 0x17f   : > { %v1266_v3 = vsub.f32 %v1199_v16, %v1250_v21  ;;  %v1265_v7 = vsub.f32 %v1198_v14, %v1249_v36  ;;  %v1296_v9 = vmul.f32 %v3845_v39, %v3845_v39  ;;  %v1295_v44 = vmul.f32 %v3848_v61, %v3848_v61  ;;  %2865 = vmatpush3.bf16.msra.mxu1 %v3130_v62 }
 0x180   : > { %v1231_v52 = vpop.xlane.xlu1 %1230  ;;  %v1229_v54 = vpop.xlane.xlu0 %1228  ;;  %v710_v62 = vsel %vm694_vm14, 1.0, %v3312_v47 }
 0x181   : > { %v1252_v41 = vmul.f32 0.020833334, %v1231_v52  ;;  %v1251_v55 = vmul.f32 0.020833334, %v1229_v54  ;;  %1318 = vadd.xlane.f32.xlu1 %v1296_v9  ;;  %1316 = vadd.xlane.f32.xlu0 %v1295_v44  ;;  %v3862_v12 = vmul.f32 %v3803_v33, %v1266_v3  ;;  %v3865_v8 = vmul.f32 %v3803_v33, %v1265_v7  ;;  %v3131_v7 = vld [vmem:[%s4528_s5 + $0x28] sm:$0xff]  }
 0x182   : > { %2866 = vmatprep.subr.bf16.mxu1 %v3131_v7 }
 0x183   : > { %v1268_v14 = vsub.f32 %v1201_v28, %v1252_v41  ;;  %v1267_v16 = vsub.f32 %v1200_v32, %v1251_v55  ;;  %v1298_v57 = vmul.f32 %v3862_v12, %v3862_v12  ;;  %v1297_v59 = vmul.f32 %v3865_v8, %v3865_v8  ;;  %2867 = vmatpush3.bf16.msra.mxu1 %v3131_v7  ;;  %v3132_v41 = vld [vmem:[%s4528_s5 + $0x20] sm:$0xff]  }
 0x184   : > { %v1235_v53 = vpop.xlane.xlu1 %1234  ;;  %v1233_v60 = vpop.xlane.xlu0 %1232  ;;  %2868 = vmatprep.subr.bf16.mxu1 %v3132_v41 }
 0x185   : > { %v1254_v17 = vmul.f32 0.020833334, %v1235_v53  ;;  %v1253_v18 = vmul.f32 0.020833334, %v1233_v60  ;;  %1322 = vadd.xlane.f32.xlu1 %v1298_v57  ;;  %1320 = vadd.xlane.f32.xlu0 %v1297_v59  ;;  %v3879_v15 = vmul.f32 %v3803_v33, %v1268_v14  ;;  %v3882_v23 = vmul.f32 %v3803_v33, %v1267_v16  ;;  %v3133_v16 = vld [vmem:[%s4528_s5 + $0x18] sm:$0xff]  }
 0x186   : > { %v709_v53 = vsel %vm693_vm4, 1.0, %v3312_v47 }
 0x187   : > { %v1270_v28 = vsub.f32 %v1203_v50, %v1254_v17  ;;  %v1269_v32 = vsub.f32 %v1202_v42, %v1253_v18  ;;  %v1300_v46 = vmul.f32 %v3879_v15, %v3879_v15  ;;  %v1299_v21 = vmul.f32 %v3882_v23, %v3882_v23  ;;  %2869 = vmatpush3.bf16.msra.mxu1 %v3132_v41 }
 0x188   : > { %v1239_v36 = vpop.xlane.xlu1 %1238  ;;  %v1237_v3 = vpop.xlane.xlu0 %1236  ;;  %2870 = vmatprep.subr.bf16.mxu1 %v3133_v16 }
 0x189   : > { %v1256_v9 = vmul.f32 0.020833334, %v1239_v36  ;;  %v1255_v44 = vmul.f32 0.020833334, %v1237_v3  ;;  %1326 = vadd.xlane.f32.xlu1 %v1300_v46  ;;  %1324 = vadd.xlane.f32.xlu0 %v1299_v21  ;;  %v3896_v29 = vmul.f32 %v3803_v33, %v1270_v28  ;;  %v3899_v37 = vmul.f32 %v3803_v33, %v1269_v32  ;;  %v3136_v32 = vld [vmem:[%s4528_s5] sm:$0xff]  }
 0x18b   : > { %v1272_v42 = vsub.f32 %v1205_v6, %v1256_v9  ;;  %v1271_v50 = vsub.f32 %v1204_v11, %v1255_v44  ;;  %v1302_v38 = vmul.f32 %v3896_v29, %v3896_v29  ;;  %v1301_v52 = vmul.f32 %v3899_v37, %v3899_v37  ;;  %2871 = vmatpush3.bf16.msra.mxu1 %v3133_v16 }
 0x18c   : > { %v1241_v54 = vpop.xlane.xlu0 %1240 }
 0x18d   : > { %v1257_v55 = vmul.f32 0.020833334, %v1241_v54  ;;  %1330 = vadd.xlane.f32.xlu1 %v1302_v38  ;;  %1328 = vadd.xlane.f32.xlu0 %v1301_v52  ;;  %v3913_v43 = vmul.f32 %v3803_v33, %v1272_v42  ;;  %v3916_v63 = vmul.f32 %v3803_v33, %v1271_v50  ;;  %v713_v42 = vsel %vm697_vm15, 1.0, %v3312_v47 }
 0x18e   : > { %v714_v38 = vsel %vm698_vm0, 1.0, %v3312_v47 }
 0x18f   : > { %v1273_v6 = vsub.f32 %v1206_v34, %v1257_v55  ;;  %v1304_v11 = vmul.f32 %v3913_v43, %v3913_v43  ;;  %v1303_v14 = vmul.f32 %v3916_v63, %v3916_v63  ;;  %v3134_v34 = vld [vmem:[%s4528_s5 + $0x10] sm:$0xff]  }
 0x190   : > { %2872 = vmatprep.subr.bf16.mxu1 %v3134_v34 }
 0x191   : > { %1334 = vadd.xlane.f32.xlu1 %v1304_v11  ;;  %1332 = vadd.xlane.f32.xlu0 %v1303_v14  ;;  %v3928_v57 = vmul.f32 %v3803_v33, %v1273_v6  ;;  %v3135_v33 = vld [vmem:[%s4528_s5 + $0x8] sm:$0xff]   ;;  %v715_v14 = vsel %vm699_vm1, 1.0, %v3312_v47 }
 0x192   : > { %2873 = vmatpush3.bf16.msra.mxu1 %v3134_v34 }
 0x193   : > { %v1305_v10 = vmul.f32 %v3928_v57, %v3928_v57  ;;  %2874 = vmatprep.subr.bf16.mxu1 %v3135_v33 }
 0x195   : > { %1336 = vadd.xlane.f32.xlu0 %v1305_v10  ;;  %v716_v10 = vsel %vm700_vm2, 1.0, %v3312_v47 }
 0x196   : > { %2875 = vmatpush3.bf16.msra.mxu1 %v3135_v33 }
 0x197   : > { %2876 = vmatprep.subr.bf16.mxu1 %v3136_v32 }
 0x198   : > { %v784_v59 = vpop.f32.mrf.mxu0 }
 0x199   : > { %v3944_v18 = vadd.f32 %v784_v59, %v709_v53 }
 0x19a   : > { %v786_v60 = vpop.f32.mrf.mxu0  ;;  %2877 = vmatpush3.bf16.msra.mxu1 %v3136_v32 }
 0x19c   : > { %v787_v17 = vpop.f32.mrf.mxu0 }
 0x19d   : > { %v3946_v28 = vadd.f32 %v787_v17, %v710_v62  ;;  %v717_v17 = vsel %vm701_vm3, 1.0, %v3312_v47 }
 0x19e   : > { %v789_v46 = vpop.f32.mrf.mxu0 }
 0x19f   : > { %v3953_v21 = vpack.c.bf16 %v3946_v28, %v3944_v18  ;;  %v718_v46 = vsel %vm702_vm5, 1.0, %v3312_v47 }
 0x1a0   : > { %v3955_v36 = vpop.f32.mrf.mxu0 }
 0x1a1   : > { %2974 = vmatprep.mubr.bf16.mxu0 %v3953_v21 }
 0x1a2   : > { %v794_v3 = vpop.f32.mrf.mxu0 }
 0x1a4   : > { %v3958_v7 = vpop.f32.mrf.mxu0 }
 0x1a6   : > { %v797_v9 = vpop.f32.mrf.mxu0 }
 0x1a8   : > { %v800_v44 = vpop.f32.mrf.mxu0 }
 0x1a9   : > { %v3966_v54 = vadd.f32 %v800_v44, %v713_v42 }
 0x1aa   : > { %v802_v50 = vpop.f32.mrf.mxu0 }
 0x1ac   : > { %v803_v52 = vpop.f32.mrf.mxu0 }
 0x1ad   : > { %v3968_v41 = vadd.f32 %v803_v52, %v714_v38  ;;  %v719_v52 = vsel %vm703_vm6, 1.0, %v3312_v47 }
 0x1ae   : > { %v805_v55 = vpop.f32.mrf.mxu0 }
 0x1af   : > { %v3972_v6 = vpack.c.bf16 %v3968_v41, %v3966_v54 }
 0x1b0   : > { %v808_v11 = vpop.f32.mrf.mxu0 }
 0x1b1   : > { %v809_v59 = vadd.f32 %v808_v11, %v715_v14  ;;  %v720_v11 = vsel %vm704_vm7, 1.0, %v3312_v47 }
 0x1b2   : > { %v810_v16 = vpop.f32.mrf.mxu0 }
 0x1b4   : > { %v811_v34 = vpop.f32.mrf.mxu0 }
 0x1b5   : > { %v812_v33 = vadd.f32 %v811_v34, %v716_v10 }
 0x1b6   : > { %v813_v53 = vpop.f32.mrf.mxu0 }
 0x1b7   : > { %v3980_v60 = vpack.c.bf16 %v812_v33, %v809_v59 }
 0x1b8   : > { %v816_v62 = vpop.f32.mrf.mxu0 }
 0x1b9   : > { %v817_v9 = vadd.f32 %v816_v62, %v717_v17  ;;  %v721_v17 = vsel %vm705_vm8, 1.0, %v3312_v47 }
 0x1ba   : > { %v818_v32 = vpop.f32.mrf.mxu0 }
 0x1bc   : > { %v819_v3 = vpop.f32.mrf.mxu0 }
 0x1bd   : > { %v820_v44 = vadd.f32 %v819_v3, %v718_v46  ;;  %v722_v46 = vsel %vm706_vm9, 1.0, %v3312_v47 }
 0x1be   : > { %v821_v42 = vpop.f32.mrf.mxu0 }
 0x1bf   : > { %v3988_v50 = vpack.c.bf16 %v820_v44, %v817_v9 }
 0x1c0   : > { %v824_v38 = vpop.f32.mrf.mxu0 }
 0x1c1   : > { %v825_v16 = vadd.f32 %v824_v38, %v719_v52 }
 0x1c2   : > { %v826_v55 = vpop.f32.mrf.mxu0 }
 0x1c3   : > { %v723_v55 = vsel %vm707_vm10, 1.0, %v3312_v47 }
 0x1c4   : > { %v827_v14 = vpop.f32.mrf.mxu0 }
 0x1c5   : > { %v828_v10 = vadd.f32 %v827_v14, %v720_v11 }
 0x1c6   : > { %v829_v34 = vpop.f32.mrf.mxu0 }
 0x1c7   : > { %v3996_v53 = vpack.c.bf16 %v828_v10, %v825_v16 }
 0x1c8   : > { %v832_v62 = vpop.f32.mrf.mxu0 }
 0x1c9   : > { %v833_v42 = vadd.f32 %v832_v62, %v721_v17 }
 0x1ca   : > { %v834_v32 = vpop.f32.mrf.mxu0 }
 0x1cb   : > { %v724_v32 = vsel %vm708_vm11, 1.0, %v3312_v47 }
 0x1cc   : > { %v835_v3 = vpop.f32.mrf.mxu0 }
 0x1cd   : > { %v836_v38 = vadd.f32 %v835_v3, %v722_v46 }
 0x1ce   : > { %v837_v52 = vpop.f32.mrf.mxu0 }
 0x1cf   : > { %v4007_v11 = vpack.c.bf16 %v836_v38, %v833_v42 }
 0x1d0   : > { %v840_v14 = vpop.f32.mrf.mxu0 }
 0x1d1   : > { %v841_v34 = vadd.f32 %v840_v14, %v723_v55 }
 0x1d2   : > { %v842_v56 = vpop.f32.mrf.mxu0 }
 0x1d3   : > { %883 = vadd.xlane.f32.xlu1 %v841_v34  ;;  %v711_v56 = vsel %vm695_vm12, 1.0, %v3312_v47 }
 0x1d4   : > { %v843_v25 = vpop.f32.mrf.mxu0 }
 0x1d5   : > { %v844_v5 = vadd.f32 %v843_v25, %v724_v32  ;;  %v4028_v25 = vld [vmem:[%s375_s22] ss:$0 sm:$0xff]  ;;  %s2726_s22 = sshll.u32 %s3387_s13, 4  ;;  %s3249_s13 = scalar_lea.vmem %s4484_s24, 16 }
 0x1d6   : > { %v845_v49 = vpop.f32.mrf.mxu0  ;;  %vm908_vm4 = vcmp.eq.s32.totalorder %v3480_v40, %v4028_v25  ;;  %vm910_vm14 = vcmp.eq.s32.totalorder %v3559_v19, %v4028_v25  ;;  %vm912_vm15 = vcmp.eq.s32.totalorder %v3585_v26, %v4028_v25  ;;  %vm914_vm0 = vcmp.eq.s32.totalorder %v3604_v30, %v4028_v25  ;;  %v3150_v19 = vld [vmem:[%s4530_s7 + $0x10] sm:$0xff]   ;;  %v3152_v26 = vld [vmem:[%s4530_s7] sm:$0xff]   ;;  %s4482_s27 = scalar_lea.hbm %s4532_s9, %s2726_s22  ;;  %p3250_p11 = scmp.ne.s32.totalorder %s4484_s24, %s3249_s13 }
 0x1d7   : > { %879 = vadd.xlane.f32.xlu1 %v833_v42  ;;  %v4012_v62 = vpack.c.bf16 %v844_v5, %v841_v34  ;;  %885 = vadd.xlane.f32.xlu0 %v844_v5  ;;  %v4020_v49 = vadd.f32 %v3955_v36, %v711_v56  ;;  %v712_v5 = vsel %vm696_vm13, 1.0, %v3312_v47  ;;  %v924_v51 = vsel %vm908_vm4, 1.0, %v3312_v47  ;;  %p3257_p1 = scmp.lt.s32.totalorder %s3255_s16, %s3249_s13 }
 0x1d8   : > { %v926_v36 = vsel %vm910_vm14, 1.0, %v3312_v47  ;;  %vm916_vm1 = vcmp.eq.s32.totalorder %v3639_v48, %v4028_v25  ;;  %vm918_vm2 = vcmp.eq.s32.totalorder %v3681_v4, %v4028_v25  ;;  %vm920_vm3 = vcmp.eq.s32.totalorder %v3723_v24, %v4028_v25  ;;  %p3251_p12 = pnand %p3250_p11, %p3404_p5 }
 0x1d9   : > { %v934_v17 = vsel %vm918_vm2, 1.0, %v3312_v47  ;;  %v936_v14 = vsel %vm920_vm3, 1.0, %v3312_v47  ;;  %vm922_vm5 = vcmp.eq.s32.totalorder %v3765_v0, %v4028_v25  ;;  %vm909_vm6 = vcmp.eq.s32.totalorder %v3492_v45, %v4028_v25  ;;  %p3258_p2 = por %p3257_p1, %p3256_p0 }
 0x1da   : > { %vm2701_vm7 = vmpackc.low %vm909_vm6, %vm908_vm4  ;;  %vm911_vm8 = vcmp.eq.s32.totalorder %v3562_v20, %v4028_v25  ;;  %vm913_vm9 = vcmp.eq.s32.totalorder %v3588_v27, %v4028_v25  ;;  %vm915_vm10 = vcmp.eq.s32.totalorder %v3607_v31, %v4028_v25  ;;  %vm923_vm4 = vcmp.eq.s32.totalorder %v3768_v1, %v4028_v25  ;;  %v3151_v20 = vld [vmem:[%s4530_s7 + $0x8] sm:$0xff]   ;;  %p3252_p13 = pneg %p3251_p12 }
 0x1db   : > { %875 = vadd.xlane.f32.xlu1 %v825_v16  ;;  %881 = vadd.xlane.f32.xlu0 %v836_v38  ;;  %v929_v45 = vsel %vm913_vm9, 1.0, %v3312_v47 }
 0x1dc   : > { %p3259_p3 = pnand %p3258_p2, %p3252_p13 }
 0x1df   : > { %871 = vadd.xlane.f32.xlu1 %v817_v9  ;;  %877 = vadd.xlane.f32.xlu0 %v828_v10 }
 0x1e3   : > { %867 = vadd.xlane.f32.xlu1 %v809_v59  ;;  %873 = vadd.xlane.f32.xlu0 %v820_v44  ;;  %v4031_v59 = vadd.f32 %v3958_v7, %v712_v5 }
 0x1e7   : > { %863 = vadd.xlane.f32.xlu1 %v3966_v54  ;;  %869 = vadd.xlane.f32.xlu0 %v812_v33 }
 0x1eb   : > { %859 = vadd.xlane.f32.xlu1 %v4020_v49  ;;  %865 = vadd.xlane.f32.xlu0 %v3968_v41  ;;  %v932_v41 = vsel %vm916_vm1, 1.0, %v3312_v47 }
 0x1ef   : > { %855 = vadd.xlane.f32.xlu1 %v3944_v18  ;;  %861 = vadd.xlane.f32.xlu0 %v4031_v59  ;;  %v928_v18 = vsel %vm912_vm15, 1.0, %v3312_v47 }
 0x1f3   : > { %940 = vadd.xlane.f32.xlu1 %v924_v51  ;;  %857 = vadd.xlane.f32.xlu0 %v3946_v28  ;;  %v930_v28 = vsel %vm914_vm0, 1.0, %v3312_v47 }
 0x1f7   : > { %944 = vadd.xlane.f32.xlu1 %v926_v36 }
 0x1fb   : > { %948 = vadd.xlane.f32.xlu1 %v928_v18  ;;  %v938_v18 = vsel %vm922_vm5, 1.0, %v3312_v47 }
 0x1fe   : > { %v1307_v7 = vpop.xlane.xlu1 %1306 }
 0x1ff   : > { %v1338_v54 = vmul.f32 0.020833334, %v1307_v7  ;;  %952 = vadd.xlane.f32.xlu1 %v930_v28 }
 0x201   : > { %v1354_v33 = vadd.f32 1e-05, %v1338_v54 }
 0x202   : > { %v1311_v9 = vpop.xlane.xlu1 %1310  ;;  %v1309_v44 = vpop.xlane.xlu0 %1308 }
 0x203   : > { %3153 = vrsqrt.f32 %v1354_v33  ;;  %956 = vadd.xlane.f32.xlu1 %v932_v41  ;;  %v1340_v16 = vmul.f32 0.020833334, %v1311_v9  ;;  %v1339_v10 = vmul.f32 0.020833334, %v1309_v44 }
 0x205   : > { %v1356_v46 = vadd.f32 1e-05, %v1340_v16  ;;  %v1355_v3 = vadd.f32 1e-05, %v1339_v10 }
 0x206   : > { %v1315_v42 = vpop.xlane.xlu1 %1314  ;;  %v1313_v38 = vpop.xlane.xlu0 %1312 }
 0x207   : > { %3155 = vrsqrt.f32 %v1356_v46  ;;  %960 = vadd.xlane.f32.xlu1 %v934_v17  ;;  %v1342_v52 = vmul.f32 0.020833334, %v1315_v42  ;;  %v1341_v55 = vmul.f32 0.020833334, %v1313_v38 }
 0x208   : > { %3157 = vrsqrt.f32 %v1355_v3 }
 0x209   : > { %v1358_v34 = vadd.f32 1e-05, %v1342_v52  ;;  %v1357_v32 = vadd.f32 1e-05, %v1341_v55  ;;  %v4090_v52 = vld [vmem:[%s4531_s8 + $0x1] ss:$0 sm:$0xff] }
 0x20a   : > { %v1319_v56 = vpop.xlane.xlu1 %1318  ;;  %v1317_v5 = vpop.xlane.xlu0 %1316 }
 0x20b   : > { %3159 = vrsqrt.f32 %v1358_v34  ;;  %964 = vadd.xlane.f32.xlu1 %v936_v14  ;;  %v1344_v51 = vmul.f32 0.020833334, %v1319_v56  ;;  %v1343_v36 = vmul.f32 0.020833334, %v1317_v5 }
 0x20c   : > { %3161 = vrsqrt.f32 %v1357_v32 }
 0x20d   : > { %v1360_v28 = vadd.f32 1e-05, %v1344_v51  ;;  %v1359_v7 = vadd.f32 1e-05, %v1343_v36 }
 0x20e   : > { %v1323_v54 = vpop.xlane.xlu1 %1322  ;;  %v1321_v41 = vpop.xlane.xlu0 %1320 }
 0x20f   : > { %3163 = vrsqrt.f32 %v1360_v28  ;;  %968 = vadd.xlane.f32.xlu1 %v938_v18  ;;  %v1346_v33 = vmul.f32 0.020833334, %v1323_v54  ;;  %v1345_v9 = vmul.f32 0.020833334, %v1321_v41 }
 0x210   : > { %v3154_v44 = vpop.eup %3153  ;;  %3165 = vrsqrt.f32 %v1359_v7  ;;  %v4098_v7 = vld [vmem:[%s4531_s8 + $0x2] ss:$0 sm:$0xff] }
 0x211   : > { %v1362_v16 = vadd.f32 1e-05, %v1346_v33  ;;  %v1361_v10 = vadd.f32 1e-05, %v1345_v9  ;;  %v1386_v3 = vmul.f32 %v3154_v44, %v3808_v13 }
 0x212   : > { %v1327_v17 = vpop.xlane.xlu1 %1326  ;;  %v1325_v46 = vpop.xlane.xlu0 %1324 }
 0x213   : > { %3167 = vrsqrt.f32 %v1362_v16  ;;  %v1348_v42 = vmul.f32 0.020833334, %v1327_v17  ;;  %v1347_v38 = vmul.f32 0.020833334, %v1325_v46  ;;  %v1406_v13 = vmul.f32 %v4090_v52, %v1386_v3 }
 0x214   : > { %v3156_v55 = vpop.eup %3155  ;;  %3169 = vrsqrt.f32 %v1361_v10 }
 0x215   : > { %v3158_v14 = vpop.eup %3157  ;;  %v1388_v34 = vmul.f32 %v3156_v55, %v3820_v35  ;;  %v1364_v32 = vadd.f32 1e-05, %v1348_v42  ;;  %v1363_v56 = vadd.f32 1e-05, %v1347_v38  ;;  %v1426_v17 = vadd.f32 %v4098_v7, %v1406_v13 }
 0x216   : > { %v1331_v5 = vpop.xlane.xlu1 %1330  ;;  %v1329_v51 = vpop.xlane.xlu0 %1328  ;;  %v1387_v36 = vmul.f32 %v3158_v14, %v3817_v2 }
 0x217   : > { %3171 = vrsqrt.f32 %v1364_v32  ;;  %v1350_v18 = vmul.f32 0.020833334, %v1331_v5  ;;  %v1349_v28 = vmul.f32 0.020833334, %v1329_v51  ;;  %v1408_v44 = vmul.f32 %v4090_v52, %v1388_v34 }
 0x218   : > { %v3160_v54 = vpop.eup %3159  ;;  %3173 = vrsqrt.f32 %v1363_v56  ;;  %v1407_v35 = vmul.f32 %v4090_v52, %v1387_v36 }
 0x219   : > { %v3162_v41 = vpop.eup %3161  ;;  %v1366_v33 = vadd.f32 1e-05, %v1350_v18  ;;  %v1365_v9 = vadd.f32 1e-05, %v1349_v28  ;;  %v1390_v3 = vmul.f32 %v3160_v54, %v3831_v22  ;;  %v1428_v51 = vadd.f32 %v4098_v7, %v1408_v44 }
 0x21a   : > { %v1389_v2 = vmul.f32 %v3162_v41, %v3834_v58  ;;  %v1335_v16 = vpop.xlane.xlu1 %1334  ;;  %v1333_v10 = vpop.xlane.xlu0 %1332  ;;  %v1427_v46 = vadd.f32 %v4098_v7, %v1407_v35  ;;  %v389_v58 = vld [vmem:[%s4531_s8 + $0x7] sm:$0x1] }
 0x21b   : > { %3175 = vrsqrt.f32 %v1366_v33  ;;  %v1352_v42 = vmul.f32 0.020833334, %v1335_v16  ;;  %v1351_v38 = vmul.f32 0.020833334, %v1333_v10  ;;  %v1410_v18 = vmul.f32 %v4090_v52, %v1390_v3 }
 0x21c   : > { %v3164_v55 = vpop.eup %3163  ;;  %3177 = vrsqrt.f32 %v1365_v9  ;;  %v1442_v14 = vpack.c.bf16 %v1427_v46, %v1426_v17  ;;  %v1409_v32 = vmul.f32 %v4090_v52, %v1389_v2 }
 0x21d   : > { %v3166_v56 = vpop.eup %3165  ;;  %v1368_v34 = vadd.f32 1e-05, %v1352_v42  ;;  %v1367_v5 = vadd.f32 1e-05, %v1351_v38  ;;  %v1392_v28 = vmul.f32 %v3164_v55, %v3845_v39  ;;  %v1430_v16 = vadd.f32 %v4098_v7, %v1410_v18 }
 0x21e   : > { %2878 = vmatprep.mubr.bf16.mxu1 %v1442_v14  ;;  %v1337_v36 = vpop.xlane.xlu0 %1336  ;;  %v1429_v22 = vadd.f32 %v4098_v7, %v1409_v32  ;;  %v1391_v13 = vmul.f32 %v3166_v56, %v3848_v61 }
 0x21f   : > { %3179 = vrsqrt.f32 %v1368_v34  ;;  %v1353_v54 = vmul.f32 0.020833334, %v1337_v36  ;;  %v1412_v39 = vmul.f32 %v4090_v52, %v1392_v28 }
 0x220   : > { %v3168_v35 = vpop.eup %3167  ;;  %3181 = vrsqrt.f32 %v1367_v5  ;;  %2455 = vperm.xlu1 %3120, %v389_v58   ;;  %v1443_v41 = vpack.c.bf16 %v1429_v22, %v1428_v51  ;;  %v1411_v33 = vmul.f32 %v4090_v52, %v1391_v13 }
 0x221   : > { %v3170_v9 = vpop.eup %3169  ;;  %v1369_v44 = vadd.f32 1e-05, %v1353_v54  ;;  %v1394_v2 = vmul.f32 %v3168_v35, %v3862_v12  ;;  %v1432_v12 = vadd.f32 %v4098_v7, %v1412_v39 }
 0x222   : > { %2879 = vmatmul.mubr.bf16.vlgmr.msra.gmra.mxu1 %v1443_v41  ;;  %v1431_v61 = vadd.f32 %v4098_v7, %v1411_v33  ;;  %v1393_v10 = vmul.f32 %v3170_v9, %v3865_v8 }
 0x223   : > { %3183 = vrsqrt.f32 %v1369_v44  ;;  %v1414_v38 = vmul.f32 %v4090_v52, %v1394_v2 }
 0x224   : > { %v3172_v17 = vpop.eup %3171  ;;  %v1444_v46 = vpack.c.bf16 %v1431_v61, %v1430_v16  ;;  %v1413_v3 = vmul.f32 %v4090_v52, %v1393_v10 }
 0x225   : > { %v3174_v42 = vpop.eup %3173  ;;  %v1396_v32 = vmul.f32 %v3172_v17, %v3879_v15  ;;  %v1434_v58 = vadd.f32 %v4098_v7, %v1414_v38 }
 0x226   : > { %2882 = vmatprep.mubr.bf16.mxu1 %v1444_v46  ;;  %v1433_v55 = vadd.f32 %v4098_v7, %v1413_v3  ;;  %v1395_v14 = vmul.f32 %v3174_v42, %v3882_v23 }
 0x227   : > { %v1416_v22 = vmul.f32 %v4090_v52, %v1396_v32 }
 0x228   : > { %v3176_v8 = vpop.eup %3175  ;;  %v1445_v56 = vpack.c.bf16 %v1433_v55, %v1432_v12  ;;  %v1415_v34 = vmul.f32 %v4090_v52, %v1395_v14 }
 0x229   : > { %v3178_v5 = vpop.eup %3177  ;;  %v1398_v13 = vmul.f32 %v3176_v8, %v3896_v29  ;;  %v1436_v35 = vadd.f32 %v4098_v7, %v1416_v22 }
 0x22a   : > { %2883 = vmatmul.mubr.bf16.gmra.mxu1 %v1445_v56  ;;  %v1435_v51 = vadd.f32 %v4098_v7, %v1415_v34  ;;  %v1397_v36 = vmul.f32 %v3178_v5, %v3899_v37 }
 0x22b   : > { %v1418_v37 = vmul.f32 %v4090_v52, %v1398_v13 }
 0x22c   : > { %v3180_v18 = vpop.eup %3179  ;;  %v1446_v23 = vpack.c.bf16 %v1435_v51, %v1434_v58  ;;  %v1417_v15 = vmul.f32 %v4090_v52, %v1397_v36 }
 0x22d   : > { %v3182_v28 = vpop.eup %3181  ;;  %v1400_v54 = vmul.f32 %v3180_v18, %v3913_v43  ;;  %v1438_v43 = vadd.f32 %v4098_v7, %v1418_v37 }
 0x22e   : > { %2886 = vmatprep.mubr.bf16.mxu1 %v1446_v23  ;;  %v1437_v41 = vadd.f32 %v4098_v7, %v1417_v15  ;;  %v1399_v33 = vmul.f32 %v3182_v28, %v3916_v63 }
 0x22f   : > { %v1420_v16 = vmul.f32 %v4090_v52, %v1400_v54 }
 0x230   : > { %v3184_v9 = vpop.eup %3183  ;;  %v1447_v44 = vpack.c.bf16 %v1437_v41, %v1436_v35  ;;  %v1419_v29 = vmul.f32 %v4090_v52, %v1399_v33 }
 0x231   : > { %v1401_v2 = vmul.f32 %v3184_v9, %v3928_v57  ;;  %v1440_v63 = vadd.f32 %v4098_v7, %v1420_v16 }
 0x232   : > { %2887 = vmatmul.mubr.bf16.gmra.mxu1 %v1447_v44  ;;  %v1439_v61 = vadd.f32 %v4098_v7, %v1419_v29 }
 0x233   : > { %v1421_v10 = vmul.f32 %v4090_v52, %v1401_v2 }
 0x234   : > { %v1448_v39 = vpack.c.bf16 %v1439_v61, %v1438_v43 }
 0x235   : > { %v1441_v17 = vadd.f32 %v4098_v7, %v1421_v10 }
 0x236   : > { %2890 = vmatprep.mubr.bf16.mxu1 %v1448_v39 }
 0x237   : > { %v1449_v46 = vpack.c.bf16 %v1441_v17, %v1440_v63 }
 0x23a   : > { %2891 = vmatmul.mubr.bf16.gmra.mxu1 %v1449_v46 }
 0x23b   : > { %2910 = vmatprep.mubr.bf16.mxu1 %v3953_v21 }
 0x25c   : > { %v884_v3 = vpop.xlane.xlu1 %883 }
 0x25d   : > { %3185 = vrsqrt.f32 %v884_v3 }
 0x260   : > { %v886_v57 = vpop.xlane.xlu0 %885  ;;  %v880_v55 = vpop.xlane.xlu1 %879 }
 0x261   : > { %3187 = vrsqrt.f32 %v886_v57 }
 0x262   : > { %3189 = vrsqrt.f32 %v880_v55 }
 0x264   : > { %v882_v42 = vpop.xlane.xlu0 %881  ;;  %v876_v7 = vpop.xlane.xlu1 %875 }
 0x265   : > { %3191 = vrsqrt.f32 %v882_v42 }
 0x268   : > { %v878_v52 = vpop.xlane.xlu0 %877  ;;  %v872_v58 = vpop.xlane.xlu1 %871 }
 0x269   : > { %3193 = vrsqrt.f32 %v878_v52 }
 0x26a   : > { %3195 = vrsqrt.f32 %v876_v7  ;;  %v4162_v54 = vpop.eup %3185 }
 0x26c   : > { %v874_v34 = vpop.xlane.xlu0 %873  ;;  %v868_v18 = vpop.xlane.xlu1 %867 }
 0x26d   : > { %3197 = vrsqrt.f32 %v874_v34 }
 0x26e   : > { %3199 = vrsqrt.f32 %v872_v58  ;;  %v4164_v41 = vpop.eup %3187 }
 0x26f   : > { %v4166_v9 = vpop.eup %3189 }
 0x270   : > { %v870_v36 = vpop.xlane.xlu0 %869  ;;  %v864_v33 = vpop.xlane.xlu1 %863 }
 0x271   : > { %3201 = vrsqrt.f32 %v870_v36 }
 0x272   : > { %3203 = vrsqrt.f32 %v868_v18  ;;  %v4170_v2 = vpop.eup %3191 }
 0x274   : > { %v866_v15 = vpop.xlane.xlu0 %865  ;;  %v860_v3 = vpop.xlane.xlu1 %859 }
 0x275   : > { %3205 = vrsqrt.f32 %v866_v15 }
 0x276   : > { %v4174_v63 = vpop.eup %3193  ;;  %3207 = vrsqrt.f32 %v864_v33 }
 0x277   : > { %v4177_v57 = vpop.eup %3195 }
 0x278   : > { %v862_v16 = vpop.xlane.xlu0 %861  ;;  %v856_v18 = vpop.xlane.xlu1 %855 }
 0x279   : > { %3209 = vrsqrt.f32 %v862_v16 }
 0x27a   : > { %v4180_v55 = vpop.eup %3197  ;;  %3211 = vrsqrt.f32 %v860_v3  ;;  %v3143_v3 = vld [vmem:[%s4529_s6 + $0x8] sm:$0xff]  }
 0x27b   : > { %v4183_v58 = vpop.eup %3199 }
 0x27c   : > { %v858_v52 = vpop.xlane.xlu0 %857  ;;  %v941_v30 = vpop.xlane.xlu1 %940 }
 0x27d   : > { %3213 = vrsqrt.f32 %v858_v52 }
 0x27e   : > { %3215 = vrsqrt.f32 %v856_v18 }
 0x280   : > { %v945_v48 = vpop.xlane.xlu1 %944 }
 0x284   : > { %v949_v24 = vpop.xlane.xlu1 %948 }
 0x2e2   : > { %v4148_v38 = vpop.f32.mrf.mxu1 }
 0x2e4   : > { %v4150_v12 = vpop.f32.mrf.mxu1 }
 0x2e6   : > { %v4152_v14 = vpop.f32.mrf.mxu1 }
 0x2e8   : > { %v4154_v32 = vpop.f32.mrf.mxu1 }
 0x2ea   : > { %v4156_v8 = vpop.f32.mrf.mxu1 }
 0x2ec   : > { %v4158_v56 = vpop.f32.mrf.mxu1 }
 0x2ee   : > { %v2885_v21 = vpop.f32.mrf.mxu1 }
 0x2f0   : > { %v4160_v5 = vpop.f32.mrf.mxu1 }
 0x2f2   : > { %v2888_v51 = vpop.f32.mrf.mxu1 }
 0x2f3   : > { %v1621_v42 = vmul.f32 %v4177_v57, %v2888_v51 }
 0x2f4   : > { %v1580_v22 = vpop.f32.mrf.mxu1 }
 0x2f5   : > { %v1619_v36 = vmul.f32 %v4183_v58, %v1580_v22 }
 0x2f6   : > { %v2889_v13 = vpop.f32.mrf.mxu1 }
 0x2f7   : > { %v1622_v17 = vmul.f32 %v4174_v63, %v2889_v13  ;;  %v4186_v13 = vpop.eup %3201 }
 0x2f8   : > { %v1583_v23 = vpop.f32.mrf.mxu1  ;;  %v1618_v51 = vmul.f32 %v4186_v13, %v2885_v21 }
 0x2f9   : > { %v1632_v7 = vpack.c.bf16 %v1622_v17, %v1621_v42  ;;  %v1620_v34 = vmul.f32 %v4180_v55, %v1583_v23  ;;  %v4222_v17 = vpack.c.bf16 %v4031_v59, %v4020_v49  ;;  %v3140_v49 = vld [vmem:[%s4529_s6 + $0x20] sm:$0xff]   ;;  %v3141_v59 = vld [vmem:[%s4529_s6 + $0x18] sm:$0xff]  }
 0x2fa   : > { %v2892_v28 = vpop.f32.mrf.mxu1  ;;  %v3144_v42 = vld [vmem:[%s4529_s6] sm:$0xff]  }
 0x2fb   : > { %v1625_v44 = vmul.f32 %v4162_v54, %v2892_v28  ;;  %v1631_v15 = vpack.c.bf16 %v1620_v34, %v1619_v36  ;;  %v4189_v28 = vpop.eup %3203 }
 0x2fc   : > { %v1596_v35 = vpop.f32.mrf.mxu1  ;;  %v1617_v23 = vmul.f32 %v4189_v28, %v4156_v8 }
 0x2fd   : > { %v1623_v61 = vmul.f32 %v4166_v9, %v1596_v35  ;;  %v4193_v35 = vpop.eup %3205 }
 0x2fe   : > { %v2893_v37 = vpop.f32.mrf.mxu1  ;;  %v1630_v33 = vpack.c.bf16 %v1618_v51, %v1617_v23  ;;  %v1616_v22 = vmul.f32 %v4193_v35, %v4160_v5  ;;  %v4257_v51 = vld [vmem:[%s4531_s8 + $0x3] ss:$0 sm:$0xff] }
 0x2ff   : > { %v1626_v29 = vmul.f32 %v4164_v41, %v2893_v37  ;;  %v4197_v37 = vpop.eup %3207 }
 0x300   : > { %v1599_v43 = vpop.f32.mrf.mxu1  ;;  %v1615_v21 = vmul.f32 %v4197_v37, %v4158_v56 }
 0x301   : > { %v1634_v10 = vpack.c.bf16 %v1626_v29, %v1625_v44  ;;  %v1624_v39 = vmul.f32 %v4170_v2, %v1599_v43  ;;  %v4201_v44 = vpop.eup %3209 }
 0x302   : > { %v1614_v29 = vmul.f32 %v4201_v44, %v4152_v14  ;;  %v1629_v8 = vpack.c.bf16 %v1616_v22, %v1615_v21  ;;  %v4205_v16 = vpop.eup %3211 }
 0x303   : > { %v1633_v46 = vpack.c.bf16 %v1624_v39, %v1623_v61  ;;  %2894 = vmatprep.subr.bf16.mxu1 %v1634_v10  ;;  %v1613_v43 = vmul.f32 %v4205_v16, %v4148_v38  ;;  %v4209_v5 = vpop.eup %3213  ;;  %v3137_v38 = vld [vmem:[%s4529_s6 + $0x38] sm:$0xff]  }
 0x304   : > { %2895 = vmatpush3.bf16.msra.mxu1 %v1634_v10  ;;  %v1612_v56 = vmul.f32 %v4209_v5, %v4154_v32  ;;  %v4213_v10 = vpop.eup %3215  ;;  %v3138_v32 = vld [vmem:[%s4529_s6 + $0x30] sm:$0xff]  }
 0x305   : > { %2896 = vmatprep.subr.bf16.mxu1 %v1633_v46  ;;  %v1628_v61 = vpack.c.bf16 %v1614_v29, %v1613_v43  ;;  %v1611_v14 = vmul.f32 %v4213_v10, %v4150_v12  ;;  %v3139_v12 = vld [vmem:[%s4529_s6 + $0x28] sm:$0xff]  }
 0x307   : > { %v1627_v39 = vpack.c.bf16 %v1612_v56, %v1611_v14 }
 0x308   : > { %2897 = vmatpush3.bf16.msra.mxu1 %v1633_v46  ;;  %v3142_v46 = vld [vmem:[%s4529_s6 + $0x10] sm:$0xff]  }
 0x309   : > { %2898 = vmatprep.subr.bf16.mxu1 %v1632_v7 }
 0x30c   : > { %2899 = vmatpush3.bf16.msra.mxu1 %v1632_v7 }
 0x30d   : > { %2900 = vmatprep.subr.bf16.mxu1 %v1631_v15 }
 0x310   : > { %2901 = vmatpush3.bf16.msra.mxu1 %v1631_v15 }
 0x311   : > { %2902 = vmatprep.subr.bf16.mxu1 %v1630_v33 }
 0x314   : > { %2903 = vmatpush3.bf16.msra.mxu1 %v1630_v33 }
 0x315   : > { %2904 = vmatprep.subr.bf16.mxu1 %v1629_v8 }
 0x318   : > { %2905 = vmatpush3.bf16.msra.mxu1 %v1629_v8 }
 0x319   : > { %2906 = vmatprep.subr.bf16.mxu1 %v1628_v61 }
 0x31c   : > { %2907 = vmatpush3.bf16.msra.mxu1 %v1628_v61 }
 0x31d   : > { %2908 = vmatprep.subr.bf16.mxu1 %v1627_v39 }
 0x320   : > { %2909 = vmatpush3.bf16.msra.mxu1 %v1627_v39 }
 0x321   : > { %2926 = vmatprep.subr.bf16.mxu1 %v3137_v38 }
 0x323   : > { %2911 = vmatmul.mubr.bf16.vlgmr.msra.gmra.mxu1 %v4222_v17 }
 0x324   : > { %2914 = vmatprep.mubr.bf16.mxu1 %v3972_v6  ;;  %2927 = vmatpush3.bf16.msra.mxu1 %v3137_v38 }
 0x325   : > { %2928 = vmatprep.subr.bf16.mxu1 %v3138_v32 }
 0x328   : > { %2929 = vmatpush3.bf16.msra.mxu1 %v3138_v32 }
 0x329   : > { %2930 = vmatprep.subr.bf16.mxu1 %v3139_v12 }
 0x32b   : > { %2915 = vmatmul.mubr.bf16.gmra.mxu1 %v3980_v60 }
 0x32c   : > { %2918 = vmatprep.mubr.bf16.mxu1 %v3988_v50  ;;  %2931 = vmatpush3.bf16.msra.mxu1 %v3139_v12 }
 0x32d   : > { %2932 = vmatprep.subr.bf16.mxu1 %v3140_v49 }
 0x330   : > { %2933 = vmatpush3.bf16.msra.mxu1 %v3140_v49 }
 0x331   : > { %2934 = vmatprep.subr.bf16.mxu1 %v3141_v59 }
 0x333   : > { %2919 = vmatmul.mubr.bf16.gmra.mxu1 %v3996_v53 }
 0x334   : > { %2922 = vmatprep.mubr.bf16.mxu1 %v4007_v11  ;;  %2935 = vmatpush3.bf16.msra.mxu1 %v3141_v59 }
 0x335   : > { %2936 = vmatprep.subr.bf16.mxu1 %v3142_v46 }
 0x338   : > { %2937 = vmatpush3.bf16.msra.mxu1 %v3142_v46 }
 0x339   : > { %2938 = vmatprep.subr.bf16.mxu1 %v3143_v3 }
 0x33b   : > { %2923 = vmatmul.mubr.bf16.gmra.mxu1 %v4012_v62 }
 0x33c   : > { %2939 = vmatpush3.bf16.msra.mxu1 %v3143_v3 }
 0x33d   : > { %2940 = vmatprep.subr.bf16.mxu1 %v3144_v42 }
 0x340   : > { %2941 = vmatpush3.bf16.msra.mxu1 %v3144_v42 }
 0x3e3   : > { %v2912_v52 = vpop.f32.mrf.mxu1 }
 0x3e4   : > { %v1734_v36 = vmul.f32 %v4205_v16, %v2912_v52 }
 0x3e5   : > { %v1669_v7 = vpop.f32.mrf.mxu1 }
 0x3e6   : > { %v1732_v34 = vmul.f32 %v4213_v10, %v1669_v7  ;;  %v1754_v29 = vadd.f32 %v4257_v51, %v1734_v36 }
 0x3e7   : > { %v2913_v18 = vpop.f32.mrf.mxu1 }
 0x3e8   : > { %v1735_v15 = vmul.f32 %v4201_v44, %v2913_v18  ;;  %v1752_v33 = vadd.f32 %v4257_v51, %v1732_v34  ;;  %v1770_v32 = vmax.f32 %v1754_v29, 0.0 }
 0x3e9   : > { %v1672_v23 = vpop.f32.mrf.mxu1 }
 0x3ea   : > { %v1755_v22 = vadd.f32 %v4257_v51, %v1735_v15  ;;  %v1733_v21 = vmul.f32 %v4209_v5, %v1672_v23  ;;  %v1768_v14 = vmax.f32 %v1752_v33, 0.0 }
 0x3eb   : > { %v2916_v8 = vpop.f32.mrf.mxu1 }
 0x3ec   : > { %v1753_v43 = vadd.f32 %v4257_v51, %v1733_v21  ;;  %v1771_v61 = vmax.f32 %v1755_v22, 0.0  ;;  %v1738_v12 = vmul.f32 %v4189_v28, %v2916_v8 }
 0x3ed   : > { %v1685_v56 = vpop.f32.mrf.mxu1 }
 0x3ee   : > { %v1769_v39 = vmax.f32 %v1753_v43, 0.0  ;;  %v1736_v38 = vmul.f32 %v4197_v37, %v1685_v56  ;;  %v1785_v3 = vpack.c.bf16 %v1771_v61, %v1770_v32  ;;  %v1758_v36 = vadd.f32 %v4257_v51, %v1738_v12 }
 0x3ef   : > { %v2917_v49 = vpop.f32.mrf.mxu1 }
 0x3f0   : > { %v1739_v59 = vmul.f32 %v4186_v13, %v2917_v49  ;;  %v1784_v46 = vpack.c.bf16 %v1769_v39, %v1768_v14  ;;  %v1756_v52 = vadd.f32 %v4257_v51, %v1736_v38  ;;  %v1774_v8 = vmax.f32 %v1758_v36, 0.0 }
 0x3f1   : > { %v1688_v42 = vpop.f32.mrf.mxu1 }
 0x3f2   : > { %v1759_v7 = vadd.f32 %v4257_v51, %v1739_v59  ;;  %v1737_v34 = vmul.f32 %v4193_v35, %v1688_v42  ;;  %2942 = vmatprep.mubr.bf16.mxu1 %v1784_v46  ;;  %v1772_v22 = vmax.f32 %v1756_v52, 0.0 }
 0x3f3   : > { %v2920_v18 = vpop.f32.mrf.mxu1  ;;  %2943 = vmatmul.mubr.bf16.vlgmr.msra.gmra.mxu1 %v1785_v3 }
 0x3f4   : > { %v1757_v15 = vadd.f32 %v4257_v51, %v1737_v34  ;;  %v1775_v23 = vmax.f32 %v1759_v7, 0.0  ;;  %v1742_v43 = vmul.f32 %v4177_v57, %v2920_v18 }
 0x3f5   : > { %v1701_v33 = vpop.f32.mrf.mxu1 }
 0x3f6   : > { %v1773_v21 = vmax.f32 %v1757_v15, 0.0  ;;  %v1740_v29 = vmul.f32 %v4183_v58, %v1701_v33  ;;  %v1787_v38 = vpack.c.bf16 %v1775_v23, %v1774_v8  ;;  %v1762_v59 = vadd.f32 %v4257_v51, %v1742_v43 }
 0x3f7   : > { %v2921_v61 = vpop.f32.mrf.mxu1 }
 0x3f8   : > { %v1743_v56 = vmul.f32 %v4174_v63, %v2921_v61  ;;  %v1786_v14 = vpack.c.bf16 %v1773_v21, %v1772_v22  ;;  %v1760_v32 = vadd.f32 %v4257_v51, %v1740_v29  ;;  %v1778_v18 = vmax.f32 %v1762_v59, 0.0 }
 0x3f9   : > { %v1704_v39 = vpop.f32.mrf.mxu1 }
 0x3fa   : > { %v1763_v12 = vadd.f32 %v4257_v51, %v1743_v56  ;;  %v1741_v49 = vmul.f32 %v4180_v55, %v1704_v39  ;;  %2946 = vmatprep.mubr.bf16.mxu1 %v1786_v14  ;;  %v1776_v7 = vmax.f32 %v1760_v32, 0.0 }
 0x3fb   : > { %v2924_v46 = vpop.f32.mrf.mxu1  ;;  %2947 = vmatmul.mubr.bf16.gmra.mxu1 %v1787_v38 }
 0x3fc   : > { %v1761_v3 = vadd.f32 %v4257_v51, %v1741_v49  ;;  %v1779_v42 = vmax.f32 %v1763_v12, 0.0  ;;  %v1746_v15 = vmul.f32 %v4162_v54, %v2924_v46  ;;  %v4546_v46 = vmov 1.0|1.0  }
 0x3fd   : > { %v1717_v52 = vpop.f32.mrf.mxu1 }
 0x3fe   : > { %v1777_v34 = vmax.f32 %v1761_v3, 0.0  ;;  %v1744_v36 = vmul.f32 %v4166_v9, %v1717_v52  ;;  %v1789_v29 = vpack.c.bf16 %v1779_v42, %v1778_v18  ;;  %v1766_v56 = vadd.f32 %v4257_v51, %v1746_v15 }
 0x3ff   : > { %v2925_v23 = vpop.f32.mrf.mxu1 }
 0x400   : > { %v1747_v33 = vmul.f32 %v4164_v41, %v2925_v23  ;;  %v1788_v22 = vpack.c.bf16 %v1777_v34, %v1776_v7  ;;  %v1764_v8 = vadd.f32 %v4257_v51, %v1744_v36  ;;  %v1782_v12 = vmax.f32 %v1766_v56, 0.0 }
 0x401   : > { %v1720_v21 = vpop.f32.mrf.mxu1 }
 0x402   : > { %v1767_v43 = vadd.f32 %v4257_v51, %v1747_v33  ;;  %v1745_v61 = vmul.f32 %v4170_v2, %v1720_v21  ;;  %2950 = vmatprep.mubr.bf16.mxu1 %v1788_v22  ;;  %v1780_v38 = vmax.f32 %v1764_v8, 0.0 }
 0x403   : > { %2951 = vmatmul.mubr.bf16.gmra.mxu1 %v1789_v29 }
 0x404   : > { %v1765_v14 = vadd.f32 %v4257_v51, %v1745_v61  ;;  %v1783_v39 = vmax.f32 %v1767_v43, 0.0 }
 0x406   : > { %v1781_v32 = vmax.f32 %v1765_v14, 0.0  ;;  %v1791_v59 = vpack.c.bf16 %v1783_v39, %v1782_v12 }
 0x408   : > { %v1790_v49 = vpack.c.bf16 %v1781_v32, %v1780_v38 }
 0x40a   : > { %2954 = vmatprep.mubr.bf16.mxu1 %v1790_v49 }
 0x40b   : > { %2955 = vmatmul.mubr.bf16.gmra.mxu1 %v1791_v59 }
 0x40c   : > { %3006 = vmatprep.mubr.msk.bf16.mxu1 %vm2701_vm7, %v4546_v46  ;;  %vm2705_vm7 = vmpackc.low %vm913_vm9, %vm912_vm15 }
 0x4b3   : > { %v2944_v51 = vpop.f32.mrf.mxu1 }
 0x4b5   : > { %v1890_v3 = vpop.f32.mrf.mxu1 }
 0x4b7   : > { %v2945_v42 = vpop.f32.mrf.mxu1 }
 0x4b9   : > { %v1893_v52 = vpop.f32.mrf.mxu1 }
 0x4bb   : > { %v2948_v7 = vpop.f32.mrf.mxu1 }
 0x4bd   : > { %v1906_v34 = vpop.f32.mrf.mxu1 }
 0x4bf   : > { %v2949_v36 = vpop.f32.mrf.mxu1 }
 0x4c1   : > { %v1909_v18 = vpop.f32.mrf.mxu1 }
 0x4c3   : > { %v2952_v15 = vpop.f32.mrf.mxu1 }
 0x4c4   : > { %v1963_v12 = vmul.f32 %v4177_v57, %v2952_v15  ;;  %v1957_v15 = vmul.f32 %v4197_v37, %v1906_v34  ;;  %v4549_v34 = vld [vmem:[#allocation7_spill] sm:$0xff] }
 0x4c5   : > { %v1922_v23 = vpop.f32.mrf.mxu1  ;;  %vm921_vm13 = vcmp.eq.s32.totalorder %v4549_v34, %v4028_v25 }
 0x4c7   : > { %v2953_v40 = vpop.f32.mrf.mxu1 }
 0x4c8   : > { %v1964_v38 = vmul.f32 %v4174_v63, %v2953_v40 }
 0x4c9   : > { %v1925_v33 = vpop.f32.mrf.mxu1 }
 0x4ca   : > { %v1974_v49 = vpack.c.bf16 %v1964_v38, %v1963_v12  ;;  %v1962_v59 = vmul.f32 %v4180_v55, %v1925_v33  ;;  %v1956_v33 = vmul.f32 %v4201_v44, %v2945_v42  ;;  %v3148_v42 = vld [vmem:[%s4530_s7 + $0x20] sm:$0xff]   ;;  %v939_v38 = vsel %vm923_vm4, 1.0, %v3312_v47 }
 0x4cb   : > { %v2956_v22 = vpop.f32.mrf.mxu1 }
 0x4cc   : > { %v1967_v8 = vmul.f32 %v4162_v54, %v2956_v22  ;;  %v1961_v22 = vmul.f32 %v4183_v58, %v1922_v23  ;;  %v1955_v23 = vmul.f32 %v4205_v16, %v2944_v51  ;;  %v925_v51 = vsel %vm909_vm6, 1.0, %v3312_v47  ;;  %vm2703_vm6 = vmpackc.low %vm911_vm8, %vm910_vm14 }
 0x4cd   : > { %v1938_v21 = vpop.f32.mrf.mxu1  ;;  %942 = vadd.xlane.f32.xlu0 %v925_v51  ;;  %vm2707_vm14 = vmpackc.low %vm915_vm10, %vm914_vm0 }
 0x4ce   : > { %v1965_v56 = vmul.f32 %v4166_v9, %v1938_v21  ;;  %v1960_v21 = vmul.f32 %v4186_v13, %v2949_v36  ;;  %v1970_v36 = vpack.c.bf16 %v1956_v33, %v1955_v23  ;;  %vm2713_vm0 = vmpackc.low %vm921_vm13, %vm920_vm3 }
 0x4cf   : > { %v2957_v29 = vpop.f32.mrf.mxu1 }
 0x4d0   : > { %v1968_v43 = vmul.f32 %v4164_v41, %v2957_v29  ;;  %v1973_v29 = vpack.c.bf16 %v1962_v59, %v1961_v22 }
 0x4d1   : > { %v1941_v61 = vpop.f32.mrf.mxu1 }
 0x4d2   : > { %v1976_v14 = vpack.c.bf16 %v1968_v43, %v1967_v8  ;;  %v1966_v39 = vmul.f32 %v4170_v2, %v1941_v61  ;;  %v1959_v8 = vmul.f32 %v4189_v28, %v2948_v7  ;;  %v1958_v43 = vmul.f32 %v4193_v35, %v1909_v18  ;;  %v3149_v18 = vld [vmem:[%s4530_s7 + $0x18] sm:$0xff]  }
 0x4d3   : > { %v1953_v7 = vmul.f32 %v4213_v10, %v1890_v3  ;;  %v4548_v3 = vld [vmem:[#allocation6_spill] sm:$0xff] }
 0x4d4   : > { %v1975_v32 = vpack.c.bf16 %v1966_v39, %v1965_v56  ;;  %2958 = vmatprep.subr.bf16.mxu0 %v1976_v14  ;;  %v1972_v40 = vpack.c.bf16 %v1960_v21, %v1959_v8  ;;  %v1971_v61 = vpack.c.bf16 %v1958_v43, %v1957_v15  ;;  %v1954_v56 = vmul.f32 %v4209_v5, %v1893_v52 }
 0x4d5   : > { %2959 = vmatpush3.bf16.msra.mxu0 %v1976_v14  ;;  %vm919_vm12 = vcmp.eq.s32.totalorder %v4548_v3, %v4028_v25  ;;  %v937_v39 = vsel %vm921_vm13, 1.0, %v3312_v47 }
 0x4d6   : > { %2960 = vmatprep.subr.bf16.mxu0 %v1975_v32  ;;  %v1969_v14 = vpack.c.bf16 %v1954_v56, %v1953_v7  ;;  %v935_v52 = vsel %vm919_vm12, 1.0, %v3312_v47  ;;  %v2700_v7 = vld [vmem:[%s4531_s8 + $0x4] ss:$0 sm:$0xff] }
 0x4d9   : > { %2961 = vmatpush3.bf16.msra.mxu0 %v1975_v32 }
 0x4da   : > { %2962 = vmatprep.subr.bf16.mxu0 %v1974_v49 }
 0x4dd   : > { %2963 = vmatpush3.bf16.msra.mxu0 %v1974_v49 }
 0x4de   : > { %2964 = vmatprep.subr.bf16.mxu0 %v1973_v29 }
 0x4e1   : > { %2965 = vmatpush3.bf16.msra.mxu0 %v1973_v29 }
 0x4e2   : > { %2966 = vmatprep.subr.bf16.mxu0 %v1972_v40 }
 0x4e5   : > { %2967 = vmatpush3.bf16.msra.mxu0 %v1972_v40 }
 0x4e6   : > { %2968 = vmatprep.subr.bf16.mxu0 %v1971_v61 }
 0x4e9   : > { %2969 = vmatpush3.bf16.msra.mxu0 %v1971_v61 }
 0x4ea   : > { %2970 = vmatprep.subr.bf16.mxu0 %v1970_v36 }
 0x4ed   : > { %2971 = vmatpush3.bf16.msra.mxu0 %v1970_v36 }
 0x4ee   : > { %2972 = vmatprep.subr.bf16.mxu0 %v1969_v14 }
 0x4f1   : > { %2973 = vmatpush3.bf16.msra.mxu0 %v1969_v14 }
 0x4f4   : > { %2975 = vmatmul.mubr.bf16.vlgmr.msra.gmra.mxu0 %v4222_v17  ;;  %v3145_v17 = vld [vmem:[%s4530_s7 + $0x38] sm:$0xff]  }
 0x4f5   : > { %2978 = vmatprep.mubr.bf16.mxu0 %v3972_v6  ;;  %v3146_v6 = vld [vmem:[%s4530_s7 + $0x30] sm:$0xff]   ;;  %3022 = vmatprep.subr.bf16.mxu0 %v3145_v17 }
 0x4f6   : > { %3023 = vmatpush3.bf16.msra.mxu0 %v3145_v17 }
 0x4f7   : > { %3024 = vmatprep.subr.bf16.mxu0 %v3146_v6 }
 0x4fa   : > { %3025 = vmatpush3.bf16.msra.mxu0 %v3146_v6 }
 0x4fc   : > { %2979 = vmatmul.mubr.bf16.gmra.mxu0 %v3980_v60  ;;  %v927_v60 = vsel %vm911_vm8, 1.0, %v3312_v47  ;;  %vm2711_vm8 = vmpackc.low %vm919_vm12, %vm918_vm2  ;;  %vm3314_vm2 = vmmov 0  }
 0x4fd   : > { %2982 = vmatprep.mubr.bf16.mxu0 %v3988_v50  ;;  %946 = vadd.xlane.f32.xlu0 %v927_v60  ;;  %v931_v50 = vsel %vm915_vm10, 1.0, %v3312_v47 }
 0x501   : > { %950 = vadd.xlane.f32.xlu0 %v929_v45 }
 0x504   : > { %2983 = vmatmul.mubr.bf16.gmra.mxu0 %v3996_v53  ;;  %v4547_v53 = vld [vmem:[#allocation5_spill] sm:$0xff] }
 0x505   : > { %2986 = vmatprep.mubr.bf16.mxu0 %v4007_v11  ;;  %vm917_vm11 = vcmp.eq.s32.totalorder %v4547_v53, %v4028_v25  ;;  %954 = vadd.xlane.f32.xlu0 %v931_v50  ;;  %v3147_v11 = vld [vmem:[%s4530_s7 + $0x28] sm:$0xff]   ;;  %v972_v25 = vmax.f32 %v941_v30, 1.0 }
 0x506   : > { %3026 = vmatprep.subr.bf16.mxu0 %v3147_v11  ;;  %vm2709_vm15 = vmpackc.low %vm917_vm11, %vm916_vm1 }
 0x507   : > { %3027 = vmatpush3.bf16.msra.mxu0 %v3147_v11  ;;  %vm2715_vm1 = vmpackc.low %vm923_vm4, %vm922_vm5 }
 0x508   : > { %3028 = vmatprep.subr.bf16.mxu0 %v3148_v42 }
 0x50b   : > { %3029 = vmatpush3.bf16.msra.mxu0 %v3148_v42 }
 0x50c   : > { %2987 = vmatmul.mubr.bf16.gmra.mxu0 %v4012_v62  ;;  %v933_v62 = vsel %vm917_vm11, 1.0, %v3312_v47  ;;  %3030 = vmatprep.subr.bf16.mxu0 %v3149_v18 }
 0x50d   : > { %958 = vadd.xlane.f32.xlu0 %v933_v62 }
 0x50f   : > { %3031 = vmatpush3.bf16.msra.mxu0 %v3149_v18 }
 0x510   : > { %3032 = vmatprep.subr.bf16.mxu0 %v3150_v19 }
 0x511   : > { %962 = vadd.xlane.f32.xlu0 %v935_v52 }
 0x513   : > { %3033 = vmatpush3.bf16.msra.mxu0 %v3150_v19 }
 0x514   : > { %3034 = vmatprep.subr.bf16.mxu0 %v3151_v20 }
 0x515   : > { %966 = vadd.xlane.f32.xlu0 %v937_v39 }
 0x517   : > { %3035 = vmatpush3.bf16.msra.mxu0 %v3151_v20 }
 0x518   : > { %3036 = vmatprep.subr.bf16.mxu0 %v3152_v26 }
 0x519   : > { %970 = vadd.xlane.f32.xlu0 %v939_v38 }
 0x51b   : > { %3037 = vmatpush3.bf16.msra.mxu0 %v3152_v26 }
 0x556   : > { %v943_v27 = vpop.xlane.xlu0 %942 }
 0x557   : > { %v973_v53 = vmax.f32 %v943_v27, 1.0 }
 0x586   : > { %v947_v31 = vpop.xlane.xlu0 %946 }
 0x587   : > { %v975_v1 = vmax.f32 %v947_v31, 1.0 }
 0x589   : > { %3217 = vrcp.f32 %v975_v1 }
 0x58a   : > { %v951_v4 = vpop.xlane.xlu0 %950  ;;  %3219 = vrcp.f32 %v972_v25 }
 0x58e   : > { %v955_v0 = vpop.xlane.xlu0 %954 }
 0x596   : > { %v959_v3 = vpop.xlane.xlu0 %958 }
 0x5b4   : > { %v2976_v32 = vpop.f32.mrf.mxu0 }
 0x5b6   : > { %v4382_v12 = vpop.f32.mrf.mxu0 }
 0x5b8   : > { %v2977_v49 = vpop.f32.mrf.mxu0 }
 0x5ba   : > { %v2014_v59 = vpop.f32.mrf.mxu0 }
 0x5bc   : > { %v2980_v22 = vpop.f32.mrf.mxu0 }
 0x5be   : > { %v2027_v21 = vpop.f32.mrf.mxu0 }
 0x5c0   : > { %v2981_v29 = vpop.f32.mrf.mxu0 }
 0x5c2   : > { %v2030_v8 = vpop.f32.mrf.mxu0 }
 0x5c4   : > { %v2984_v40 = vpop.f32.mrf.mxu0 }
 0x5c5   : > { %v2084_v60 = vmul.f32 %v4177_v57, %v2984_v40 }
 0x5c6   : > { %v2043_v43 = vpop.f32.mrf.mxu0 }
 0x5c7   : > { %v2104_v39 = vadd.f32 %v2700_v7, %v2084_v60 }
 0x5c8   : > { %v2985_v15 = vpop.f32.mrf.mxu0 }
 0x5c9   : > { %v2085_v14 = vmul.f32 %v4174_v63, %v2985_v15  ;;  %v2082_v63 = vmul.f32 %v4183_v58, %v2043_v43 }
 0x5ca   : > { %v2046_v33 = vpop.f32.mrf.mxu0 }
 0x5cb   : > { %v2105_v62 = vadd.f32 %v2700_v7, %v2085_v14 }
 0x5cc   : > { %v2988_v61 = vpop.f32.mrf.mxu0 }
 0x5cd   : > { %v2088_v23 = vmul.f32 %v4162_v54, %v2988_v61  ;;  %v2121_v57 = vmax.f32 %v2105_v62, 0.0 }
 0x5ce   : > { %v2059_v36 = vpop.f32.mrf.mxu0 }
 0x5cf   : > { %v2086_v56 = vmul.f32 %v4166_v9, %v2059_v36  ;;  %v2108_v17 = vadd.f32 %v2700_v7, %v2088_v23  ;;  %v2083_v9 = vmul.f32 %v4180_v55, %v2046_v33  ;;  %v2120_v36 = vmax.f32 %v2104_v39, 0.0 }
 0x5d0   : > { %v2989_v51 = vpop.f32.mrf.mxu0  ;;  %v2102_v55 = vadd.f32 %v2700_v7, %v2082_v63  ;;  %v977_v39 = vmax.f32 %v951_v4, 1.0 }
 0x5d1   : > { %v2089_v6 = vmul.f32 %v4164_v41, %v2989_v51  ;;  %v2106_v50 = vadd.f32 %v2700_v7, %v2086_v56  ;;  %v2124_v42 = vmax.f32 %v2108_v17, 0.0  ;;  %v2081_v41 = vmul.f32 %v4186_v13, %v2981_v29 }
 0x5d2   : > { %v2062_v45 = vpop.f32.mrf.mxu0  ;;  %v2103_v40 = vadd.f32 %v2700_v7, %v2083_v9  ;;  %v2079_v56 = vmul.f32 %v4193_v35, %v2030_v8  ;;  %v2139_v58 = vpack.c.bf16 %v2121_v57, %v2120_v36  ;;  %v2078_v51 = vmul.f32 %v4197_v37, %v2027_v21  ;;  %v3218_v57 = vpop.eup %3217 }
 0x5d3   : > { %v2109_v11 = vadd.f32 %v2700_v7, %v2089_v6  ;;  %v2087_v54 = vmul.f32 %v4170_v2, %v2062_v45  ;;  %v2122_v38 = vmax.f32 %v2106_v50, 0.0  ;;  %v2080_v2 = vmul.f32 %v4189_v28, %v2980_v22 }
 0x5d4   : > { %v2101_v33 = vadd.f32 %v2700_v7, %v2081_v41  ;;  %v2119_v14 = vmax.f32 %v2103_v40, 0.0  ;;  %v2118_v13 = vmax.f32 %v2102_v55, 0.0  ;;  %v2077_v29 = vmul.f32 %v4201_v44, %v2977_v49 }
 0x5d5   : > { %v2125_v52 = vmax.f32 %v2109_v11, 0.0  ;;  %v2107_v18 = vadd.f32 %v2700_v7, %v2087_v54  ;;  %v2100_v43 = vadd.f32 %v2700_v7, %v2080_v2  ;;  %v2099_v6 = vadd.f32 %v2700_v7, %v2079_v56 }
 0x5d6   : > { %v2117_v17 = vmax.f32 %v2101_v33, 0.0  ;;  %v2138_v60 = vpack.c.bf16 %v2119_v14, %v2118_v13  ;;  %v2076_v28 = vmul.f32 %v4205_v16, %v2976_v32  ;;  %v2098_v45 = vadd.f32 %v2700_v7, %v2078_v51 }
 0x5d7   : > { %v2123_v15 = vmax.f32 %v2107_v18, 0.0  ;;  %v2141_v61 = vpack.c.bf16 %v2125_v52, %v2124_v42  ;;  %v2116_v22 = vmax.f32 %v2100_v43, 0.0  ;;  %v2097_v35 = vadd.f32 %v2700_v7, %v2077_v29  ;;  %v963_v52 = vpop.xlane.xlu0 %962 }
 0x5d8   : > { %v2075_v8 = vmul.f32 %v4209_v5, %v2014_v59  ;;  %v2115_v50 = vmax.f32 %v2099_v6, 0.0  ;;  %v2096_v37 = vadd.f32 %v2700_v7, %v2076_v28  ;;  %v2074_v21 = vmul.f32 %v4213_v10, %v4382_v12  ;;  %v953_v10 = vpop.xlane.xlu1 %952 }
 0x5d9   : > { %2990 = vmatprep.subr.bf16.mxu1 %v2141_v61  ;;  %v2140_v23 = vpack.c.bf16 %v2123_v15, %v2122_v38  ;;  %v2137_v11 = vpack.c.bf16 %v2117_v17, %v2116_v22  ;;  %v2114_v44 = vmax.f32 %v2098_v45, 0.0  ;;  %v2113_v49 = vmax.f32 %v2097_v35, 0.0 }
 0x5da   : > { %2991 = vmatpush3.bf16.msra.mxu1 %v2141_v61  ;;  %v2095_v54 = vadd.f32 %v2700_v7, %v2075_v8  ;;  %v2112_v16 = vmax.f32 %v2096_v37, 0.0  ;;  %v2094_v32 = vadd.f32 %v2700_v7, %v2074_v21  ;;  %v979_v12 = vmax.f32 %v955_v0, 1.0 }
 0x5db   : > { %2992 = vmatprep.subr.bf16.mxu1 %v2140_v23  ;;  %v2136_v62 = vpack.c.bf16 %v2115_v50, %v2114_v44  ;;  %v976_v7 = vmax.f32 %v949_v24, 1.0  ;;  %v978_v18 = vmax.f32 %v953_v10, 1.0  ;;  %v967_v15 = vpop.xlane.xlu0 %966  ;;  %v983_v41 = vmax.f32 %v963_v52, 1.0 }
 0x5dc   : > { %v2111_v9 = vmax.f32 %v2095_v54, 0.0  ;;  %v2135_v42 = vpack.c.bf16 %v2113_v49, %v2112_v16  ;;  %v2110_v5 = vmax.f32 %v2094_v32, 0.0  ;;  %v957_v34 = vpop.xlane.xlu1 %956  ;;  %v981_v56 = vmax.f32 %v959_v3, 1.0 }
 0x5dd   : > { %v980_v40 = vmax.f32 %v957_v34, 1.0  ;;  %v985_v49 = vmax.f32 %v967_v15, 1.0 }
 0x5de   : > { %2993 = vmatpush3.bf16.msra.mxu1 %v2140_v23  ;;  %v2134_v59 = vpack.c.bf16 %v2111_v9, %v2110_v5  ;;  %v3220_v23 = vpop.eup %3219 }
 0x5df   : > { %2994 = vmatprep.subr.bf16.mxu1 %v2139_v58  ;;  %v971_v29 = vpop.xlane.xlu0 %970 }
 0x5e0   : > { %v961_v63 = vpop.xlane.xlu1 %960  ;;  %v987_v45 = vmax.f32 %v971_v29, 1.0 }
 0x5e1   : > { %v982_v2 = vmax.f32 %v961_v63, 1.0 }
 0x5e2   : > { %2995 = vmatpush3.bf16.msra.mxu1 %v2139_v58 }
 0x5e3   : > { %2996 = vmatprep.subr.bf16.mxu1 %v2138_v60 }
 0x5e4   : > { %v965_v33 = vpop.xlane.xlu1 %964 }
 0x5e5   : > { %v984_v8 = vmax.f32 %v965_v33, 1.0 }
 0x5e6   : > { %2997 = vmatpush3.bf16.msra.mxu1 %v2138_v60 }
 0x5e7   : > { %2998 = vmatprep.subr.bf16.mxu1 %v2137_v11 }
 0x5e8   : > { %v969_v50 = vpop.xlane.xlu1 %968 }
 0x5e9   : > { %v986_v37 = vmax.f32 %v969_v50, 1.0 }
 0x5ea   : > { %2999 = vmatpush3.bf16.msra.mxu1 %v2137_v11 }
 0x5eb   : > { %3000 = vmatprep.subr.bf16.mxu1 %v2136_v62 }
 0x5ee   : > { %3001 = vmatpush3.bf16.msra.mxu1 %v2136_v62 }
 0x5ef   : > { %3002 = vmatprep.subr.bf16.mxu1 %v2135_v42 }
 0x5f2   : > { %3003 = vmatpush3.bf16.msra.mxu1 %v2135_v42 }
 0x5f3   : > { %3004 = vmatprep.subr.bf16.mxu1 %v2134_v59 }
 0x5f6   : > { %3005 = vmatpush3.bf16.msra.mxu1 %v2134_v59 }
 0x5f7   : > { %3054 = vmatprep.subr.bf16.mxu1 %v3312_v47 }
 0x5f9   : > { %3007 = vmatmul.mubr.msk.bf16.vlgmr.msra.gmra.mxu1 %vm2703_vm6, %v4546_v46 }
 0x5fa   : > { %3010 = vmatprep.mubr.msk.bf16.mxu1 %vm2705_vm7, %v4546_v46 }
 0x601   : > { %3011 = vmatmul.mubr.msk.bf16.gmra.mxu1 %vm2707_vm14, %v4546_v46 }
 0x602   : > { %3014 = vmatprep.mubr.msk.bf16.mxu1 %vm2709_vm15, %v4546_v46 }
 0x609   : > { %3015 = vmatmul.mubr.msk.bf16.gmra.mxu1 %vm2711_vm8, %v4546_v46 }
 0x60a   : > { %3018 = vmatprep.mubr.msk.bf16.mxu1 %vm2713_vm0, %v4546_v46 }
 0x611   : > { %3019 = vmatmul.mubr.msk.bf16.gmra.mxu1 %vm2715_vm1, %v4546_v46  ;;  %v974_v46 = vmax.f32 %v945_v48, 1.0 }
 0x612   : > { %3070 = vmatprep.mubr.msk.bf16.mxu1 %vm3314_vm2, %v3312_v47 }
 0x613   : > { %3221 = vrcp.f32 %v974_v46 }
 0x614   : > { %3223 = vrcp.f32 %v973_v53 }
 0x615   : > { %3225 = vrcp.f32 %v979_v12 }
 0x616   : > { %3227 = vrcp.f32 %v976_v7 }
 0x617   : > { %3229 = vrcp.f32 %v978_v18 }
 0x618   : > { %3231 = vrcp.f32 %v977_v39 }
 0x619   : > { %3233 = vrcp.f32 %v983_v41 }
 0x61a   : > { %3235 = vrcp.f32 %v980_v40 }
 0x61b   : > { %3237 = vrcp.f32 %v982_v2 }
 0x61c   : > { %3239 = vrcp.f32 %v981_v56 }
 0x61d   : > { %3241 = vrcp.f32 %v987_v45 }
 0x61e   : > { %3243 = vrcp.f32 %v984_v8 }
 0x61f   : > { %3245 = vrcp.f32 %v986_v37 }
 0x620   : > { %v3222_v55 = vpop.eup %3221  ;;  %3247 = vrcp.f32 %v985_v49 }
 0x621   : > { %v3224_v14 = vpop.eup %3223 }
 0x622   : > { %v3226_v35 = vpop.eup %3225 }
 0x623   : > { %v3228_v11 = vpop.eup %3227 }
 0x624   : > { %v3230_v44 = vpop.eup %3229 }
 0x625   : > { %v3232_v54 = vpop.eup %3231 }
 0x626   : > { %v3234_v26 = vpop.eup %3233 }
 0x627   : > { %v3236_v27 = vpop.eup %3235 }
 0x628   : > { %v3238_v31 = vpop.eup %3237 }
 0x629   : > { %v3240_v48 = vpop.eup %3239 }
 0x62a   : > { %v3242_v34 = vpop.eup %3241 }
 0x62b   : > { %v3244_v12 = vpop.eup %3243 }
 0x62c   : > { %v3246_v52 = vpop.eup %3245 }
 0x62d   : > { %v3248_v18 = vpop.eup %3247 }
 0x6b9   : > { %v3008_v38 = vpop.f32.mrf.mxu1 }
 0x6ba   : > { %v2241_v17 = vmul.f32 %v3222_v55, %v3008_v38 }
 0x6bb   : > { %v2176_v61 = vpop.f32.mrf.mxu1 }
 0x6bc   : > { %v2239_v51 = vmul.f32 %v3220_v23, %v2176_v61  ;;  %v2717_v23 = vld [vmem:[%s4531_s8 + $0x5] ss:$0 sm:$0xff] }
 0x6bd   : > { %v3009_v36 = vpop.f32.mrf.mxu1 }
 0x6be   : > { %v2242_v58 = vmul.f32 %v3218_v57, %v3009_v36 }
 0x6bf   : > { %v2179_v43 = vpop.f32.mrf.mxu1 }
 0x6c0   : > { %v2240_v13 = vmul.f32 %v3224_v14, %v2179_v43  ;;  %v2256_v28 = vpack.c.bf16 %v2242_v58, %v2241_v17 }
 0x6c1   : > { %v3012_v6 = vpop.f32.mrf.mxu1 }
 0x6c2   : > { %v2255_v60 = vpack.c.bf16 %v2240_v13, %v2239_v51  ;;  %v2245_v42 = vmul.f32 %v3230_v44, %v3012_v6 }
 0x6c3   : > { %v2192_v22 = vpop.f32.mrf.mxu1 }
 0x6c4   : > { %3038 = vmatprep.mubr.bf16.mxu0 %v2255_v60  ;;  %v2243_v32 = vmul.f32 %v3228_v11, %v2192_v22 }
 0x6c5   : > { %v3013_v21 = vpop.f32.mrf.mxu1  ;;  %3039 = vmatmul.mubr.bf16.vlgmr.msra.gmra.mxu0 %v2256_v28 }
 0x6c6   : > { %v2246_v62 = vmul.f32 %v3226_v35, %v3013_v21 }
 0x6c7   : > { %v2195_v16 = vpop.f32.mrf.mxu1 }
 0x6c8   : > { %v2244_v9 = vmul.f32 %v3232_v54, %v2195_v16  ;;  %v2258_v19 = vpack.c.bf16 %v2246_v62, %v2245_v42 }
 0x6c9   : > { %v3016_v5 = vpop.f32.mrf.mxu1 }
 0x6ca   : > { %v2257_v59 = vpack.c.bf16 %v2244_v9, %v2243_v32  ;;  %v2249_v25 = vmul.f32 %v3238_v31, %v3016_v5 }
 0x6cb   : > { %v2208_v20 = vpop.f32.mrf.mxu1 }
 0x6cc   : > { %3042 = vmatprep.mubr.bf16.mxu0 %v2257_v59  ;;  %v2247_v0 = vmul.f32 %v3236_v27, %v2208_v20 }
 0x6cd   : > { %v3017_v30 = vpop.f32.mrf.mxu1  ;;  %3043 = vmatmul.mubr.bf16.gmra.mxu0 %v2258_v19 }
 0x6ce   : > { %v2250_v4 = vmul.f32 %v3234_v26, %v3017_v30 }
 0x6cf   : > { %v2211_v24 = vpop.f32.mrf.mxu1 }
 0x6d0   : > { %v2248_v1 = vmul.f32 %v3240_v48, %v2211_v24  ;;  %v2260_v53 = vpack.c.bf16 %v2250_v4, %v2249_v25 }
 0x6d1   : > { %v3020_v10 = vpop.f32.mrf.mxu1 }
 0x6d2   : > { %v2259_v46 = vpack.c.bf16 %v2248_v1, %v2247_v0  ;;  %v2253_v61 = vmul.f32 %v3246_v52, %v3020_v10 }
 0x6d3   : > { %v2224_v3 = vpop.f32.mrf.mxu1 }
 0x6d4   : > { %3046 = vmatprep.mubr.bf16.mxu0 %v2259_v46  ;;  %v2251_v38 = vmul.f32 %v3244_v12, %v2224_v3 }
 0x6d5   : > { %v3021_v7 = vpop.f32.mrf.mxu1  ;;  %3047 = vmatmul.mubr.bf16.gmra.mxu0 %v2260_v53 }
 0x6d6   : > { %v2254_v39 = vmul.f32 %v3242_v34, %v3021_v7 }
 0x6d7   : > { %v2227_v63 = vpop.f32.mrf.mxu1 }
 0x6d8   : > { %v2252_v15 = vmul.f32 %v3248_v18, %v2227_v63  ;;  %v2262_v57 = vpack.c.bf16 %v2254_v39, %v2253_v61  ;;  %v388_v63 = vld [vmem:[%s4531_s8 + $0x6] sm:$0x1] }
 0x6da   : > { %v2261_v41 = vpack.c.bf16 %v2252_v15, %v2251_v38  ;;  %v2444_v38 = vpack.c.bf16 %v388_v63, %v388_v63  ;;  %v2456_v15 = vpop.permute.xlu1 %2455 }
 0x6dc   : > { %3050 = vmatprep.mubr.bf16.mxu0 %v2261_v41 }
 0x6dd   : > { %3051 = vmatmul.mubr.bf16.gmra.mxu0 %v2262_v57 }
 0x785   : > { %v3040_v40 = vpop.f32.mrf.mxu0 }
 0x786   : > { %v2374_v36 = vadd.f32 %v3040_v40, %v2717_v23 }
 0x787   : > { %v2365_v2 = vpop.f32.mrf.mxu0 }
 0x788   : > { %v2366_v33 = vadd.f32 %v2717_v23, %v2365_v2  ;;  %v2430_v58 = vmax.f32 %v2374_v36, 0.0 }
 0x789   : > { %v3041_v55 = vpop.f32.mrf.mxu0 }
 0x78a   : > { %v2377_v56 = vadd.f32 %v3041_v55, %v2717_v23  ;;  %v2428_v29 = vmax.f32 %v2366_v33, 0.0 }
 0x78b   : > { %v2368_v14 = vpop.f32.mrf.mxu0 }
 0x78c   : > { %v2431_v43 = vmax.f32 %v2377_v56, 0.0  ;;  %v2369_v51 = vadd.f32 %v2717_v23, %v2368_v14 }
 0x78d   : > { %v3044_v13 = vpop.f32.mrf.mxu0 }
 0x78e   : > { %v2446_v17 = vpack.c.bf16 %v2431_v43, %v2430_v58  ;;  %v2429_v6 = vmax.f32 %v2369_v51, 0.0  ;;  %v2390_v46 = vadd.f32 %v3044_v13, %v2717_v23 }
 0x78f   : > { %v2381_v60 = vpop.f32.mrf.mxu0 }
 0x790   : > { %v2445_v28 = vpack.c.bf16 %v2429_v6, %v2428_v29  ;;  %v2434_v3 = vmax.f32 %v2390_v46, 0.0  ;;  %v2382_v7 = vadd.f32 %v2717_v23, %v2381_v60 }
 0x791   : > { %v3045_v22 = vpop.f32.mrf.mxu0 }
 0x792   : > { %v2393_v25 = vadd.f32 %v3045_v22, %v2717_v23  ;;  %v2432_v18 = vmax.f32 %v2382_v7, 0.0 }
 0x793   : > { %v2384_v45 = vpop.f32.mrf.mxu0 }
 0x794   : > { %v2435_v53 = vmax.f32 %v2393_v25, 0.0  ;;  %v2385_v12 = vadd.f32 %v2717_v23, %v2384_v45 }
 0x795   : > { %v3048_v35 = vpop.f32.mrf.mxu0 }
 0x796   : > { %v2406_v27 = vadd.f32 %v3048_v35, %v2717_v23  ;;  %v2448_v34 = vpack.c.bf16 %v2435_v53, %v2434_v3  ;;  %v2433_v52 = vmax.f32 %v2385_v12, 0.0 }
 0x797   : > { %v2397_v8 = vpop.f32.mrf.mxu0 }
 0x798   : > { %v2438_v31 = vmax.f32 %v2406_v27, 0.0  ;;  %v2398_v24 = vadd.f32 %v2717_v23, %v2397_v8  ;;  %v2447_v39 = vpack.c.bf16 %v2433_v52, %v2432_v18 }
 0x799   : > { %v3049_v50 = vpop.f32.mrf.mxu0 }
 0x79a   : > { %v2409_v20 = vadd.f32 %v3049_v50, %v2717_v23  ;;  %v2436_v1 = vmax.f32 %v2398_v24, 0.0 }
 0x79b   : > { %v2400_v11 = vpop.f32.mrf.mxu0 }
 0x79c   : > { %v2439_v30 = vmax.f32 %v2409_v20, 0.0  ;;  %v2401_v4 = vadd.f32 %v2717_v23, %v2400_v11 }
 0x79d   : > { %v3052_v37 = vpop.f32.mrf.mxu0 }
 0x79e   : > { %v2422_v44 = vadd.f32 %v3052_v37, %v2717_v23  ;;  %v2450_v48 = vpack.c.bf16 %v2439_v30, %v2438_v31  ;;  %v2437_v0 = vmax.f32 %v2401_v4, 0.0 }
 0x79f   : > { %v2413_v21 = vpop.f32.mrf.mxu0 }
 0x7a0   : > { %v2442_v16 = vmax.f32 %v2422_v44, 0.0  ;;  %v2414_v5 = vadd.f32 %v2717_v23, %v2413_v21  ;;  %v2449_v10 = vpack.c.bf16 %v2437_v0, %v2436_v1 }
 0x7a1   : > { %v3053_v49 = vpop.f32.mrf.mxu0 }
 0x7a2   : > { %v2425_v54 = vadd.f32 %v3053_v49, %v2717_v23  ;;  %v2440_v19 = vmax.f32 %v2414_v5, 0.0 }
 0x7a3   : > { %v2416_v62 = vpop.f32.mrf.mxu0 }
 0x7a4   : > { %v2443_v32 = vmax.f32 %v2425_v54, 0.0  ;;  %v2417_v42 = vadd.f32 %v2717_v23, %v2416_v62 }
 0x7a6   : > { %v2452_v9 = vpack.c.bf16 %v2443_v32, %v2442_v16  ;;  %v2441_v59 = vmax.f32 %v2417_v42, 0.0 }
 0x7a8   : > { %3055 = vmatpush3.bf16.xpose.msra.mxu1 %v2452_v9  ;;  %v2451_v26 = vpack.c.bf16 %v2441_v59, %v2440_v19 }
 0x7a9   : > { %3056 = vmatprep.subr.bf16.mxu1 %v3312_v47 }
 0x7b0   : > { %3057 = vmatpush3.bf16.xpose.msra.mxu1 %v2451_v26 }
 0x7b1   : > { %3058 = vmatprep.subr.bf16.mxu1 %v3312_v47 }
 0x7b8   : > { %3059 = vmatpush3.bf16.xpose.msra.mxu1 %v2450_v48 }
 0x7b9   : > { %3060 = vmatprep.subr.bf16.mxu1 %v3312_v47 }
 0x7c0   : > { %3061 = vmatpush3.bf16.xpose.msra.mxu1 %v2449_v10 }
 0x7c1   : > { %3062 = vmatprep.subr.bf16.mxu1 %v3312_v47 }
 0x7c8   : > { %3063 = vmatpush3.bf16.xpose.msra.mxu1 %v2448_v34 }
 0x7c9   : > { %3064 = vmatprep.subr.bf16.mxu1 %v3312_v47 }
 0x7d0   : > { %3065 = vmatpush3.bf16.xpose.msra.mxu1 %v2447_v39 }
 0x7d1   : > { %3066 = vmatprep.subr.bf16.mxu1 %v3312_v47 }
 0x7d8   : > { %3067 = vmatpush3.bf16.xpose.msra.mxu1 %v2446_v17 }
 0x7d9   : > { %3068 = vmatprep.subr.bf16.mxu1 %v3312_v47 }
 0x7e0   : > { %3069 = vmatpush3.bf16.xpose.msra.mxu1 %v2445_v28 }
 0x7e7   : > { %3071 = vmatmul.mubr.bf16.vlgmr.msra.gmra.mxu1 %v2444_v38 }
 0x8a7   : > { %v2492_v61 = vpop.f32.mrf.mxu1 }
 0x8a8   : > { %v2493_v41 = vadd.f32 %v2492_v61, %v2456_v15 }
 0x8a9   : > { %v3072_v47 = vpop.f32.mrf.mxu1 }
 0x8aa   : > { %2498 = vst [vmem:[%s363_s23] sm:$0x1] %v2493_v41 }
 0x8ab   : > { %v2495_v57 = vpop.f32.mrf.mxu1 }
 0x8ac   : > { %3262 = shalt.err (!%p3259_p3)
}
 0x8ad   : > { %s3263_s17 = scalar_lea.hbm %s4482_s27, 16  ;;  %s3267_s23 = scalar_lea.hbm %s4532_s9, 32 }
 0x8ae   : > { %p3264_p4 = scmp.ne.s32.totalorder %s4482_s27, %s3263_s17  ;;  %p3268_p9 = scmp.lt.s32.totalorder %s4482_s27, %s4532_s9 }
 0x8af   : > { %p3269_p10 = scmp.lt.s32.totalorder %s3267_s23, %s3263_s17 }
 0x8b0   : > { %p3265_p7 = pnand %p3264_p4, %p3404_p5 }
 0x8b1   : > { %p3270_p11 = por %p3269_p10, %p3268_p9 }
 0x8b2   : > { %p3266_p8 = pneg %p3265_p7 }
 0x8b4   : > { %p3271_p12 = pnand %p3270_p11, %p3266_p8 }
 0x8b6   : > { %3274 = shalt.err (!%p3271_p12)
}
 0x8b7   : > { %3076 = dma.vmem_to_hbm [thread:$0]  (%p3404_p5), %s4484_s24, 16, %s4482_s27, %s2500_s28   ;;  %v3073_v40 = vpop.f32.mrf.mxu1 }
 0x8b8 PF: > { %p3082_p13 = scmp.ge.s32.totalorder %s3309_s12, 2  ;;  %s2524_s13 = sand.u32 1, %s3297_s30  }
 0x8b9   : > { %s2525_s29 = scalar_lea.sflag [#allocation3], %s2524_s13 }
 0x8ba   : > { %p3079_p0 = pnand %p3082_p13, %p3408_p6 }
 0x8bc   : > { %p3080_p1 = pneg %p3079_p0 }
 0x8be   : > { %3292 = dma.done.wait (%p3080_p1), %s2525_s29, 16  }
 0x8bf   : > { %3294 = vsyncadd (%p3080_p1), %s2525_s29, 4294967280  ;;  %p19_p2 = scmp.ge.s32.totalorder %s3391_s15, 4   ;;  %s4550_s30 = smov %s3301_s10 }
 0x8c0   : > { %s4551_s10 = smov %s3305_s11  ;;  %s4552_s11 = smov %s3402_s18 }
 0x8c1   : > { %s4553_s12 = smov %s3391_s15  ;;  %21 = sbr.rel (!%p19_p2) target bundleno = 3 (0x3), region = 100 }
 0x8c6   :  { %2529 = vsyncpa [#allocation3], 1 }
 0x8c7   :  { %2531 = vsyncpa [#allocation3 + $0x1], 1 }

</bundles_post_ra>
